<compile_context>
chip_gen: v7x
topology: tpu7x:2x2x1
jax: 0.10.0
libtpu: 0.0.40
codegen_flags: <defaults>
</compile_context>

<pallas_src>
import jax
import jax.numpy as jnp
from jax.experimental import pallas as pl
from jax.experimental.pallas import tpu as pltpu


def _boundary_dou_kernel(logits_ref, labels_ref, out_ref, exp_ref, acc_ref):
    # logits_ref: (C, H, W) f32 VMEM   -- one image, all classes
    # labels_ref: (H, W)    i32 VMEM   -- one image of class ids
    # out_ref:    (1, 1)    f32 SMEM   -- final scalar loss
    # exp_ref:    (C, H, W) f32 VMEM   -- cached exp(logit - max) per class
    # acc_ref:    (C, 4)    f32 SMEM   -- per-class [sum(t), boundary_cnt, intersect, z_sum]
    b = pl.program_id(0)
    nb = pl.num_programs(0)
    Cn, H, W = logits_ref.shape

    # ---- init accumulators on the first grid step ----
    @pl.when(b == 0)
    def _init():
        for i in range(Cn):
            for j in range(4):
                acc_ref[i, j] = jnp.float32(0.0)

    labels = labels_ref[...]                        # (H, W) int32

    # ---- softmax: compute each exp once (cache in VMEM), one reciprocal ----
    m = logits_ref[0]
    for c in range(1, Cn):
        m = jnp.maximum(m, logits_ref[c])
    denom = jnp.zeros_like(m)
    for c in range(Cn):
        e = jnp.exp(logits_ref[c] - m)
        exp_ref[c] = e
        denom = denom + e
    inv_denom = pl.reciprocal(denom, approx=False)  # exact; 1 recip instead of C divides

    # ---- class-independent "uniform 3x3-cross neighbourhood" mask ----
    # A pixel is interior for class i iff labels==i at the pixel AND its 4
    # in-bounds neighbours AND it is not on the image border (zero padding in
    # the reference conv means border pixels can never reach conv==5).
    # Equivalently: labels equals all 4 rolled neighbours and position is
    # interior -> one mask shared by every class, only 4 rolls per image.
    lab_f = labels.astype(jnp.float32)              # exact for small class ids
    row = jax.lax.broadcasted_iota(jnp.int32, (H, W), 0)
    col = jax.lax.broadcasted_iota(jnp.int32, (H, W), 1)
    pos_ok = (row > 0) & (row < H - 1) & (col > 0) & (col < W - 1)

    up = pltpu.roll(lab_f, shift=1, axis=0)         # labels[r-1, c] (wrap masked by pos_ok)
    down = pltpu.roll(lab_f, shift=H - 1, axis=0)   # labels[r+1, c]
    left = pltpu.roll(lab_f, shift=1, axis=1)       # labels[r, c-1]
    right = pltpu.roll(lab_f, shift=W - 1, axis=1)  # labels[r, c+1]

    uniform = ((up == lab_f) & (down == lab_f) & (left == lab_f)
               & (right == lab_f) & pos_ok).astype(jnp.float32)

    # ---- per-class partial sums (VPU compares/muls + 4 reductions each) ----
    for i in range(Cn):
        t = (labels == i).astype(jnp.float32)       # one-hot slice (H, W)
        s = exp_ref[i] * inv_denom                  # softmax prob   (H, W)

        t_sum = jnp.sum(t)                          # == count_nonzero(t) == sum(t*t)
        bnd = t_sum - jnp.sum(t * uniform)          # == count_nonzero(Y) after Y[Y==5]=0
        inter = jnp.sum(s * t)
        z_sum = jnp.sum(s * s)

        acc_ref[i, 0] = acc_ref[i, 0] + t_sum
        acc_ref[i, 1] = acc_ref[i, 1] + bnd
        acc_ref[i, 2] = acc_ref[i, 2] + inter
        acc_ref[i, 3] = acc_ref[i, 3] + z_sum

    # ---- finalize the loss on the last grid step ----
    @pl.when(b == nb - 1)
    def _finalize():
        smooth = jnp.float32(1e-5)
        total = jnp.float32(0.0)
        for i in range(Cn):
            S = acc_ref[i, 0]       # cnt_S == y_sum
            Cc = acc_ref[i, 1]      # boundary count
            It = acc_ref[i, 2]      # intersect
            Z = acc_ref[i, 3]       # z_sum
            alpha = 1.0 - (Cc + smooth) / (S + smooth)
            alpha = 2.0 * alpha - 1.0
            alpha = jnp.minimum(alpha, jnp.float32(0.8))
            loss_i = (Z + S - 2.0 * It + smooth) / (Z + S - (1.0 + alpha) * It + smooth)
            total = total + loss_i
        out_ref[0, 0] = total / jnp.float32(Cn)


def boundary_dou_loss(logits_nchw, target_bhw, n_classes):
    """logits_nchw: (B, C, H, W) float; target_bhw: (B, H, W) int class labels."""
    B, C, H, W = logits_nchw.shape
    assert C == n_classes
    logits = logits_nchw.astype(jnp.float32)
    labels = target_bhw.astype(jnp.int32)

    out = pl.pallas_call(
        _boundary_dou_kernel,
        out_shape=jax.ShapeDtypeStruct((1, 1), jnp.float32),
        grid_spec=pltpu.PrefetchScalarGridSpec(
            num_scalar_prefetch=0,
            grid=(B,),
            in_specs=[
                # one image, full class axis resident (needed for the softmax denom)
                pl.BlockSpec((None, C, H, W), lambda b: (b, 0, 0, 0)),
                pl.BlockSpec((None, H, W), lambda b: (b, 0, 0)),
            ],
            out_specs=pl.BlockSpec(memory_space=pltpu.MemorySpace.SMEM),
            scratch_shapes=[
                pltpu.VMEM((C, H, W), jnp.float32),   # exp cache
                pltpu.SMEM((C, 4), jnp.float32),      # per-class partial sums
            ],
        ),
        compiler_params=pltpu.CompilerParams(
            # batch axis is a sequential reduction into the SMEM accumulator
            dimension_semantics=("arbitrary",),
            vmem_limit_bytes=32 * 1024 * 1024,
        ),
    )(logits, labels)
    return out[0, 0]


def _reference_loss(logits, labels, n_classes):
    """Pure-JAX reference (pad + shifted adds), mirrors the PyTorch module."""
    score = jax.nn.softmax(logits.astype(jnp.float32), axis=1)
    smooth = 1e-5
    total = jnp.float32(0.0)
    for i in range(n_classes):
        t = (labels == i).astype(jnp.float32)
        s = score[:, i]
        pad = jnp.pad(t, ((0, 0), (1, 1), (1, 1)))
        conv = (pad[:, 1:-1, 1:-1] + pad[:, :-2, 1:-1] + pad[:, 2:, 1:-1]
                + pad[:, 1:-1, :-2] + pad[:, 1:-1, 2:])
        Y = conv * t
        Y = jnp.where(Y == 5.0, 0.0, Y)
        Cc = jnp.sum((Y != 0.0).astype(jnp.float32))
        S = jnp.sum((t != 0.0).astype(jnp.float32))
        alpha = 1.0 - (Cc + smooth) / (S + smooth)
        alpha = jnp.minimum(2.0 * alpha - 1.0, 0.8)
        inter = jnp.sum(s * t)
        ys = jnp.sum(t * t)
        zs = jnp.sum(s * s)
        total = total + (zs + ys - 2.0 * inter + smooth) / (
            zs + ys - (1.0 + alpha) * inter + smooth)
    return total / n_classes


if __name__ == "__main__":
    key = jax.random.PRNGKey(0)
    k1, k2 = jax.random.split(key)
    B, C, H, W = 2, 4, 16, 16
    logits = jax.random.normal(k1, (B, C, H, W), dtype=jnp.float32)
    labels = jax.random.randint(k2, (B, H, W), 0, C, dtype=jnp.int32)

    loss = boundary_dou_loss(logits, labels, C)
    jax.block_until_ready(loss)

    ref = _reference_loss(logits, labels, C)
    assert abs(float(loss) - float(ref)) < 1e-4, (float(loss), float(ref))

    print("KERNEL_OK")
</pallas_src>

<mosaic_0001>
module attributes {stable_mosaic.version = 11 : i64} {
  func.func @_boundary_dou_kernel(%arg0: i32, %arg1: memref<1x4x16x16xf32, #tpu.memory_space<vmem>>, %arg2: memref<1x16x16xi32, #tpu.memory_space<vmem>>, %arg3: memref<1x1xf32, #tpu.memory_space<smem>>, %arg4: memref<4x16x16xf32, #tpu.memory_space<vmem>>, %arg5: memref<4x4xf32, #tpu.memory_space<smem>>) attributes {dimension_semantics = [#tpu.dimension_semantics<arbitrary>], iteration_bounds = array<i64: 2>, scalar_prefetch = 0 : i64, scratch_operands = 2 : i64, tpu.core_type = #tpu.core_type<tc>, window_params = [{transform_indices = @transform_0, window_bounds = array<i64: 1, 4, 16, 16>}, {transform_indices = @transform_1, window_bounds = array<i64: 1, 16, 16>}, {transform_indices = @transform_2, window_bounds = array<i64: 1, 1>}]} {
    %c0_i32 = arith.constant 0 : i32
    %0 = arith.cmpi eq, %arg0, %c0_i32 : i32
    %1 = arith.extui %0 : i1 to i32
    %c0_i32_0 = arith.constant 0 : i32
    %2 = arith.cmpi ne, %1, %c0_i32_0 : i32
    scf.if %2 {
      %cst_146 = arith.constant 0.000000e+00 : f32
      %c0_147 = arith.constant 0 : index
      %c0_148 = arith.constant 0 : index
      %237 = memref.load %arg5[%c0_147, %c0_148] : memref<4x4xf32, #tpu.memory_space<smem>>
      memref.store %cst_146, %arg5[%c0_147, %c0_148] : memref<4x4xf32, #tpu.memory_space<smem>>
      %cst_149 = arith.constant 0.000000e+00 : f32
      %c0_150 = arith.constant 0 : index
      %c1_151 = arith.constant 1 : index
      %238 = memref.load %arg5[%c0_150, %c1_151] : memref<4x4xf32, #tpu.memory_space<smem>>
      memref.store %cst_149, %arg5[%c0_150, %c1_151] : memref<4x4xf32, #tpu.memory_space<smem>>
      %cst_152 = arith.constant 0.000000e+00 : f32
      %c0_153 = arith.constant 0 : index
      %c2_154 = arith.constant 2 : index
      %239 = memref.load %arg5[%c0_153, %c2_154] : memref<4x4xf32, #tpu.memory_space<smem>>
      memref.store %cst_152, %arg5[%c0_153, %c2_154] : memref<4x4xf32, #tpu.memory_space<smem>>
      %cst_155 = arith.constant 0.000000e+00 : f32
      %c0_156 = arith.constant 0 : index
      %c3_157 = arith.constant 3 : index
      %240 = memref.load %arg5[%c0_156, %c3_157] : memref<4x4xf32, #tpu.memory_space<smem>>
      memref.store %cst_155, %arg5[%c0_156, %c3_157] : memref<4x4xf32, #tpu.memory_space<smem>>
      %cst_158 = arith.constant 0.000000e+00 : f32
      %c1_159 = arith.constant 1 : index
      %c0_160 = arith.constant 0 : index
      %241 = memref.load %arg5[%c1_159, %c0_160] : memref<4x4xf32, #tpu.memory_space<smem>>
      memref.store %cst_158, %arg5[%c1_159, %c0_160] : memref<4x4xf32, #tpu.memory_space<smem>>
      %cst_161 = arith.constant 0.000000e+00 : f32
      %c1_162 = arith.constant 1 : index
      %c1_163 = arith.constant 1 : index
      %242 = memref.load %arg5[%c1_162, %c1_163] : memref<4x4xf32, #tpu.memory_space<smem>>
      memref.store %cst_161, %arg5[%c1_162, %c1_163] : memref<4x4xf32, #tpu.memory_space<smem>>
      %cst_164 = arith.constant 0.000000e+00 : f32
      %c1_165 = arith.constant 1 : index
      %c2_166 = arith.constant 2 : index
      %243 = memref.load %arg5[%c1_165, %c2_166] : memref<4x4xf32, #tpu.memory_space<smem>>
      memref.store %cst_164, %arg5[%c1_165, %c2_166] : memref<4x4xf32, #tpu.memory_space<smem>>
      %cst_167 = arith.constant 0.000000e+00 : f32
      %c1_168 = arith.constant 1 : index
      %c3_169 = arith.constant 3 : index
      %244 = memref.load %arg5[%c1_168, %c3_169] : memref<4x4xf32, #tpu.memory_space<smem>>
      memref.store %cst_167, %arg5[%c1_168, %c3_169] : memref<4x4xf32, #tpu.memory_space<smem>>
      %cst_170 = arith.constant 0.000000e+00 : f32
      %c2_171 = arith.constant 2 : index
      %c0_172 = arith.constant 0 : index
      %245 = memref.load %arg5[%c2_171, %c0_172] : memref<4x4xf32, #tpu.memory_space<smem>>
      memref.store %cst_170, %arg5[%c2_171, %c0_172] : memref<4x4xf32, #tpu.memory_space<smem>>
      %cst_173 = arith.constant 0.000000e+00 : f32
      %c2_174 = arith.constant 2 : index
      %c1_175 = arith.constant 1 : index
      %246 = memref.load %arg5[%c2_174, %c1_175] : memref<4x4xf32, #tpu.memory_space<smem>>
      memref.store %cst_173, %arg5[%c2_174, %c1_175] : memref<4x4xf32, #tpu.memory_space<smem>>
      %cst_176 = arith.constant 0.000000e+00 : f32
      %c2_177 = arith.constant 2 : index
      %c2_178 = arith.constant 2 : index
      %247 = memref.load %arg5[%c2_177, %c2_178] : memref<4x4xf32, #tpu.memory_space<smem>>
      memref.store %cst_176, %arg5[%c2_177, %c2_178] : memref<4x4xf32, #tpu.memory_space<smem>>
      %cst_179 = arith.constant 0.000000e+00 : f32
      %c2_180 = arith.constant 2 : index
      %c3_181 = arith.constant 3 : index
      %248 = memref.load %arg5[%c2_180, %c3_181] : memref<4x4xf32, #tpu.memory_space<smem>>
      memref.store %cst_179, %arg5[%c2_180, %c3_181] : memref<4x4xf32, #tpu.memory_space<smem>>
      %cst_182 = arith.constant 0.000000e+00 : f32
      %c3_183 = arith.constant 3 : index
      %c0_184 = arith.constant 0 : index
      %249 = memref.load %arg5[%c3_183, %c0_184] : memref<4x4xf32, #tpu.memory_space<smem>>
      memref.store %cst_182, %arg5[%c3_183, %c0_184] : memref<4x4xf32, #tpu.memory_space<smem>>
      %cst_185 = arith.constant 0.000000e+00 : f32
      %c3_186 = arith.constant 3 : index
      %c1_187 = arith.constant 1 : index
      %250 = memref.load %arg5[%c3_186, %c1_187] : memref<4x4xf32, #tpu.memory_space<smem>>
      memref.store %cst_185, %arg5[%c3_186, %c1_187] : memref<4x4xf32, #tpu.memory_space<smem>>
      %cst_188 = arith.constant 0.000000e+00 : f32
      %c3_189 = arith.constant 3 : index
      %c2_190 = arith.constant 2 : index
      %251 = memref.load %arg5[%c3_189, %c2_190] : memref<4x4xf32, #tpu.memory_space<smem>>
      memref.store %cst_188, %arg5[%c3_189, %c2_190] : memref<4x4xf32, #tpu.memory_space<smem>>
      %cst_191 = arith.constant 0.000000e+00 : f32
      %c3_192 = arith.constant 3 : index
      %c3_193 = arith.constant 3 : index
      %252 = memref.load %arg5[%c3_192, %c3_193] : memref<4x4xf32, #tpu.memory_space<smem>>
      memref.store %cst_191, %arg5[%c3_192, %c3_193] : memref<4x4xf32, #tpu.memory_space<smem>>
    } else {
    }
    %c0 = arith.constant 0 : index
    %c0_1 = arith.constant 0 : index
    %c0_2 = arith.constant 0 : index
    %3 = vector.load %arg2[%c0, %c0_1, %c0_2] : memref<1x16x16xi32, #tpu.memory_space<vmem>>, vector<1x16x16xi32>
    %4 = vector.shape_cast %3 : vector<1x16x16xi32> to vector<16x16xi32>
    %c0_3 = arith.constant 0 : index
    %c0_4 = arith.constant 0 : index
    %c0_5 = arith.constant 0 : index
    %c0_6 = arith.constant 0 : index
    %5 = vector.load %arg1[%c0_3, %c0_4, %c0_5, %c0_6] : memref<1x4x16x16xf32, #tpu.memory_space<vmem>>, vector<1x1x16x16xf32>
    %6 = vector.shape_cast %5 : vector<1x1x16x16xf32> to vector<16x16xf32>
    %c0_7 = arith.constant 0 : index
    %c1 = arith.constant 1 : index
    %c0_8 = arith.constant 0 : index
    %c0_9 = arith.constant 0 : index
    %7 = vector.load %arg1[%c0_7, %c1, %c0_8, %c0_9] : memref<1x4x16x16xf32, #tpu.memory_space<vmem>>, vector<1x1x16x16xf32>
    %8 = vector.shape_cast %7 : vector<1x1x16x16xf32> to vector<16x16xf32>
    %9 = arith.maximumf %6, %8 : vector<16x16xf32>
    %c0_10 = arith.constant 0 : index
    %c2 = arith.constant 2 : index
    %c0_11 = arith.constant 0 : index
    %c0_12 = arith.constant 0 : index
    %10 = vector.load %arg1[%c0_10, %c2, %c0_11, %c0_12] : memref<1x4x16x16xf32, #tpu.memory_space<vmem>>, vector<1x1x16x16xf32>
    %11 = vector.shape_cast %10 : vector<1x1x16x16xf32> to vector<16x16xf32>
    %12 = arith.maximumf %9, %11 : vector<16x16xf32>
    %c0_13 = arith.constant 0 : index
    %c3 = arith.constant 3 : index
    %c0_14 = arith.constant 0 : index
    %c0_15 = arith.constant 0 : index
    %13 = vector.load %arg1[%c0_13, %c3, %c0_14, %c0_15] : memref<1x4x16x16xf32, #tpu.memory_space<vmem>>, vector<1x1x16x16xf32>
    %14 = vector.shape_cast %13 : vector<1x1x16x16xf32> to vector<16x16xf32>
    %15 = arith.maximumf %12, %14 : vector<16x16xf32>
    %cst = arith.constant 0.000000e+00 : f32
    %16 = vector.broadcast %cst : f32 to vector<16x16xf32>
    %c0_16 = arith.constant 0 : index
    %c0_17 = arith.constant 0 : index
    %c0_18 = arith.constant 0 : index
    %c0_19 = arith.constant 0 : index
    %17 = vector.load %arg1[%c0_16, %c0_17, %c0_18, %c0_19] : memref<1x4x16x16xf32, #tpu.memory_space<vmem>>, vector<1x1x16x16xf32>
    %18 = vector.shape_cast %17 : vector<1x1x16x16xf32> to vector<16x16xf32>
    %19 = arith.subf %18, %15 : vector<16x16xf32>
    %20 = math.exp %19 : vector<16x16xf32>
    %c0_20 = arith.constant 0 : index
    %c0_21 = arith.constant 0 : index
    %c0_22 = arith.constant 0 : index
    %21 = vector.load %arg4[%c0_20, %c0_21, %c0_22] : memref<4x16x16xf32, #tpu.memory_space<vmem>>, vector<1x16x16xf32>
    %22 = vector.shape_cast %21 : vector<1x16x16xf32> to vector<16x16xf32>
    %23 = vector.shape_cast %20 : vector<16x16xf32> to vector<1x16x16xf32>
    tpu.vector_store %arg4[%c0_20, %c0_21, %c0_22], %23 {strides = array<i32>} : memref<4x16x16xf32, #tpu.memory_space<vmem>>, vector<1x16x16xf32>,
    %24 = arith.addf %16, %20 : vector<16x16xf32>
    %c0_23 = arith.constant 0 : index
    %c1_24 = arith.constant 1 : index
    %c0_25 = arith.constant 0 : index
    %c0_26 = arith.constant 0 : index
    %25 = vector.load %arg1[%c0_23, %c1_24, %c0_25, %c0_26] : memref<1x4x16x16xf32, #tpu.memory_space<vmem>>, vector<1x1x16x16xf32>
    %26 = vector.shape_cast %25 : vector<1x1x16x16xf32> to vector<16x16xf32>
    %27 = arith.subf %26, %15 : vector<16x16xf32>
    %28 = math.exp %27 : vector<16x16xf32>
    %c1_27 = arith.constant 1 : index
    %c0_28 = arith.constant 0 : index
    %c0_29 = arith.constant 0 : index
    %29 = vector.load %arg4[%c1_27, %c0_28, %c0_29] : memref<4x16x16xf32, #tpu.memory_space<vmem>>, vector<1x16x16xf32>
    %30 = vector.shape_cast %29 : vector<1x16x16xf32> to vector<16x16xf32>
    %31 = vector.shape_cast %28 : vector<16x16xf32> to vector<1x16x16xf32>
    tpu.vector_store %arg4[%c1_27, %c0_28, %c0_29], %31 {strides = array<i32>} : memref<4x16x16xf32, #tpu.memory_space<vmem>>, vector<1x16x16xf32>,
    %32 = arith.addf %24, %28 : vector<16x16xf32>
    %c0_30 = arith.constant 0 : index
    %c2_31 = arith.constant 2 : index
    %c0_32 = arith.constant 0 : index
    %c0_33 = arith.constant 0 : index
    %33 = vector.load %arg1[%c0_30, %c2_31, %c0_32, %c0_33] : memref<1x4x16x16xf32, #tpu.memory_space<vmem>>, vector<1x1x16x16xf32>
    %34 = vector.shape_cast %33 : vector<1x1x16x16xf32> to vector<16x16xf32>
    %35 = arith.subf %34, %15 : vector<16x16xf32>
    %36 = math.exp %35 : vector<16x16xf32>
    %c2_34 = arith.constant 2 : index
    %c0_35 = arith.constant 0 : index
    %c0_36 = arith.constant 0 : index
    %37 = vector.load %arg4[%c2_34, %c0_35, %c0_36] : memref<4x16x16xf32, #tpu.memory_space<vmem>>, vector<1x16x16xf32>
    %38 = vector.shape_cast %37 : vector<1x16x16xf32> to vector<16x16xf32>
    %39 = vector.shape_cast %36 : vector<16x16xf32> to vector<1x16x16xf32>
    tpu.vector_store %arg4[%c2_34, %c0_35, %c0_36], %39 {strides = array<i32>} : memref<4x16x16xf32, #tpu.memory_space<vmem>>, vector<1x16x16xf32>,
    %40 = arith.addf %32, %36 : vector<16x16xf32>
    %c0_37 = arith.constant 0 : index
    %c3_38 = arith.constant 3 : index
    %c0_39 = arith.constant 0 : index
    %c0_40 = arith.constant 0 : index
    %41 = vector.load %arg1[%c0_37, %c3_38, %c0_39, %c0_40] : memref<1x4x16x16xf32, #tpu.memory_space<vmem>>, vector<1x1x16x16xf32>
    %42 = vector.shape_cast %41 : vector<1x1x16x16xf32> to vector<16x16xf32>
    %43 = arith.subf %42, %15 : vector<16x16xf32>
    %44 = math.exp %43 : vector<16x16xf32>
    %c3_41 = arith.constant 3 : index
    %c0_42 = arith.constant 0 : index
    %c0_43 = arith.constant 0 : index
    %45 = vector.load %arg4[%c3_41, %c0_42, %c0_43] : memref<4x16x16xf32, #tpu.memory_space<vmem>>, vector<1x16x16xf32>
    %46 = vector.shape_cast %45 : vector<1x16x16xf32> to vector<16x16xf32>
    %47 = vector.shape_cast %44 : vector<16x16xf32> to vector<1x16x16xf32>
    tpu.vector_store %arg4[%c3_41, %c0_42, %c0_43], %47 {strides = array<i32>} : memref<4x16x16xf32, #tpu.memory_space<vmem>>, vector<1x16x16xf32>,
    %48 = arith.addf %40, %44 : vector<16x16xf32>
    %49 = tpu.reciprocal %48 : vector<16x16xf32> -> vector<16x16xf32>
    %50 = arith.sitofp %4 : vector<16x16xi32> to vector<16x16xf32>
    %51 = tpu.iota {dimensions = array<i32: 0>} : vector<16x16xi32>
    %52 = tpu.iota {dimensions = array<i32: 1>} : vector<16x16xi32>
    %c0_i32_44 = arith.constant 0 : i32
    %53 = vector.broadcast %c0_i32_44 : i32 to vector<16x16xi32>
    %54 = arith.cmpi sgt, %51, %53 : vector<16x16xi32>
    %c15_i32 = arith.constant 15 : i32
    %55 = vector.broadcast %c15_i32 : i32 to vector<16x16xi32>
    %56 = arith.cmpi slt, %51, %55 : vector<16x16xi32>
    %57 = arith.andi %54, %56 : vector<16x16xi1>
    %c0_i32_45 = arith.constant 0 : i32
    %58 = vector.broadcast %c0_i32_45 : i32 to vector<16x16xi32>
    %59 = arith.cmpi sgt, %52, %58 : vector<16x16xi32>
    %60 = arith.andi %57, %59 : vector<16x16xi1>
    %c15_i32_46 = arith.constant 15 : i32
    %61 = vector.broadcast %c15_i32_46 : i32 to vector<16x16xi32>
    %62 = arith.cmpi slt, %52, %61 : vector<16x16xi32>
    %63 = arith.andi %60, %62 : vector<16x16xi1>
    %c1_i32 = arith.constant 1 : i32
    %64 = tpu.dynamic_rotate %50 by %c1_i32 dim 0 : vector<16x16xf32>, i32 -> vector<16x16xf32>
    %c15_i32_47 = arith.constant 15 : i32
    %65 = tpu.dynamic_rotate %50 by %c15_i32_47 dim 0 : vector<16x16xf32>, i32 -> vector<16x16xf32>
    %c1_i32_48 = arith.constant 1 : i32
    %66 = tpu.dynamic_rotate %50 by %c1_i32_48 dim 1 : vector<16x16xf32>, i32 -> vector<16x16xf32>
    %c15_i32_49 = arith.constant 15 : i32
    %67 = tpu.dynamic_rotate %50 by %c15_i32_49 dim 1 : vector<16x16xf32>, i32 -> vector<16x16xf32>
    %68 = arith.cmpf oeq, %64, %50 : vector<16x16xf32>
    %69 = arith.cmpf oeq, %65, %50 : vector<16x16xf32>
    %70 = arith.andi %68, %69 : vector<16x16xi1>
    %71 = arith.cmpf oeq, %66, %50 : vector<16x16xf32>
    %72 = arith.andi %70, %71 : vector<16x16xi1>
    %73 = arith.cmpf oeq, %67, %50 : vector<16x16xf32>
    %74 = arith.andi %72, %73 : vector<16x16xi1>
    %75 = arith.andi %74, %63 : vector<16x16xi1>
    %76 = arith.extui %75 : vector<16x16xi1> to vector<16x16xi32>
    %77 = arith.sitofp %76 : vector<16x16xi32> to vector<16x16xf32>
    %c0_i32_50 = arith.constant 0 : i32
    %78 = vector.broadcast %c0_i32_50 : i32 to vector<16x16xi32>
    %79 = arith.cmpi eq, %4, %78 : vector<16x16xi32>
    %80 = arith.extui %79 : vector<16x16xi1> to vector<16x16xi32>
    %81 = arith.sitofp %80 : vector<16x16xi32> to vector<16x16xf32>
    %c0_51 = arith.constant 0 : index
    %c0_52 = arith.constant 0 : index
    %c0_53 = arith.constant 0 : index
    %82 = vector.load %arg4[%c0_51, %c0_52, %c0_53] : memref<4x16x16xf32, #tpu.memory_space<vmem>>, vector<1x16x16xf32>
    %83 = vector.shape_cast %82 : vector<1x16x16xf32> to vector<16x16xf32>
    %84 = arith.mulf %83, %49 : vector<16x16xf32>
    %85 = vector.shape_cast %81 : vector<16x16xf32> to vector<1x16x16xf32>
    %cst_54 = arith.constant dense<0.000000e+00> : vector<1xf32>
    %86 = vector.multi_reduction <add>, %85, %cst_54 [1, 2] : vector<1x16x16xf32> to vector<1xf32>
    %87 = vector.shape_cast %86 : vector<1xf32> to vector<1x1x1xf32>
    %88 = vector.extract %87[0, 0, 0] : f32 from vector<1x1x1xf32>
    %89 = arith.mulf %81, %77 : vector<16x16xf32>
    %90 = vector.shape_cast %89 : vector<16x16xf32> to vector<1x16x16xf32>
    %cst_55 = arith.constant dense<0.000000e+00> : vector<1xf32>
    %91 = vector.multi_reduction <add>, %90, %cst_55 [1, 2] : vector<1x16x16xf32> to vector<1xf32>
    %92 = vector.shape_cast %91 : vector<1xf32> to vector<1x1x1xf32>
    %93 = vector.extract %92[0, 0, 0] : f32 from vector<1x1x1xf32>
    %94 = arith.subf %88, %93 : f32
    %95 = arith.mulf %84, %81 : vector<16x16xf32>
    %96 = vector.shape_cast %95 : vector<16x16xf32> to vector<1x16x16xf32>
    %cst_56 = arith.constant dense<0.000000e+00> : vector<1xf32>
    %97 = vector.multi_reduction <add>, %96, %cst_56 [1, 2] : vector<1x16x16xf32> to vector<1xf32>
    %98 = vector.shape_cast %97 : vector<1xf32> to vector<1x1x1xf32>
    %99 = vector.extract %98[0, 0, 0] : f32 from vector<1x1x1xf32>
    %100 = arith.mulf %84, %84 : vector<16x16xf32>
    %101 = vector.shape_cast %100 : vector<16x16xf32> to vector<1x16x16xf32>
    %cst_57 = arith.constant dense<0.000000e+00> : vector<1xf32>
    %102 = vector.multi_reduction <add>, %101, %cst_57 [1, 2] : vector<1x16x16xf32> to vector<1xf32>
    %103 = vector.shape_cast %102 : vector<1xf32> to vector<1x1x1xf32>
    %104 = vector.extract %103[0, 0, 0] : f32 from vector<1x1x1xf32>
    %c0_58 = arith.constant 0 : index
    %c0_59 = arith.constant 0 : index
    %105 = memref.load %arg5[%c0_58, %c0_59] : memref<4x4xf32, #tpu.memory_space<smem>>
    %106 = arith.addf %105, %88 : f32
    %c0_60 = arith.constant 0 : index
    %c0_61 = arith.constant 0 : index
    %107 = memref.load %arg5[%c0_60, %c0_61] : memref<4x4xf32, #tpu.memory_space<smem>>
    memref.store %106, %arg5[%c0_60, %c0_61] : memref<4x4xf32, #tpu.memory_space<smem>>
    %c0_62 = arith.constant 0 : index
    %c1_63 = arith.constant 1 : index
    %108 = memref.load %arg5[%c0_62, %c1_63] : memref<4x4xf32, #tpu.memory_space<smem>>
    %109 = arith.addf %108, %94 : f32
    %c0_64 = arith.constant 0 : index
    %c1_65 = arith.constant 1 : index
    %110 = memref.load %arg5[%c0_64, %c1_65] : memref<4x4xf32, #tpu.memory_space<smem>>
    memref.store %109, %arg5[%c0_64, %c1_65] : memref<4x4xf32, #tpu.memory_space<smem>>
    %c0_66 = arith.constant 0 : index
    %c2_67 = arith.constant 2 : index
    %111 = memref.load %arg5[%c0_66, %c2_67] : memref<4x4xf32, #tpu.memory_space<smem>>
    %112 = arith.addf %111, %99 : f32
    %c0_68 = arith.constant 0 : index
    %c2_69 = arith.constant 2 : index
    %113 = memref.load %arg5[%c0_68, %c2_69] : memref<4x4xf32, #tpu.memory_space<smem>>
    memref.store %112, %arg5[%c0_68, %c2_69] : memref<4x4xf32, #tpu.memory_space<smem>>
    %c0_70 = arith.constant 0 : index
    %c3_71 = arith.constant 3 : index
    %114 = memref.load %arg5[%c0_70, %c3_71] : memref<4x4xf32, #tpu.memory_space<smem>>
    %115 = arith.addf %114, %104 : f32
    %c0_72 = arith.constant 0 : index
    %c3_73 = arith.constant 3 : index
    %116 = memref.load %arg5[%c0_72, %c3_73] : memref<4x4xf32, #tpu.memory_space<smem>>
    memref.store %115, %arg5[%c0_72, %c3_73] : memref<4x4xf32, #tpu.memory_space<smem>>
    %c1_i32_74 = arith.constant 1 : i32
    %117 = vector.broadcast %c1_i32_74 : i32 to vector<16x16xi32>
    %118 = arith.cmpi eq, %4, %117 : vector<16x16xi32>
    %119 = arith.extui %118 : vector<16x16xi1> to vector<16x16xi32>
    %120 = arith.sitofp %119 : vector<16x16xi32> to vector<16x16xf32>
    %c1_75 = arith.constant 1 : index
    %c0_76 = arith.constant 0 : index
    %c0_77 = arith.constant 0 : index
    %121 = vector.load %arg4[%c1_75, %c0_76, %c0_77] : memref<4x16x16xf32, #tpu.memory_space<vmem>>, vector<1x16x16xf32>
    %122 = vector.shape_cast %121 : vector<1x16x16xf32> to vector<16x16xf32>
    %123 = arith.mulf %122, %49 : vector<16x16xf32>
    %124 = vector.shape_cast %120 : vector<16x16xf32> to vector<1x16x16xf32>
    %cst_78 = arith.constant dense<0.000000e+00> : vector<1xf32>
    %125 = vector.multi_reduction <add>, %124, %cst_78 [1, 2] : vector<1x16x16xf32> to vector<1xf32>
    %126 = vector.shape_cast %125 : vector<1xf32> to vector<1x1x1xf32>
    %127 = vector.extract %126[0, 0, 0] : f32 from vector<1x1x1xf32>
    %128 = arith.mulf %120, %77 : vector<16x16xf32>
    %129 = vector.shape_cast %128 : vector<16x16xf32> to vector<1x16x16xf32>
    %cst_79 = arith.constant dense<0.000000e+00> : vector<1xf32>
    %130 = vector.multi_reduction <add>, %129, %cst_79 [1, 2] : vector<1x16x16xf32> to vector<1xf32>
    %131 = vector.shape_cast %130 : vector<1xf32> to vector<1x1x1xf32>
    %132 = vector.extract %131[0, 0, 0] : f32 from vector<1x1x1xf32>
    %133 = arith.subf %127, %132 : f32
    %134 = arith.mulf %123, %120 : vector<16x16xf32>
    %135 = vector.shape_cast %134 : vector<16x16xf32> to vector<1x16x16xf32>
    %cst_80 = arith.constant dense<0.000000e+00> : vector<1xf32>
    %136 = vector.multi_reduction <add>, %135, %cst_80 [1, 2] : vector<1x16x16xf32> to vector<1xf32>
    %137 = vector.shape_cast %136 : vector<1xf32> to vector<1x1x1xf32>
    %138 = vector.extract %137[0, 0, 0] : f32 from vector<1x1x1xf32>
    %139 = arith.mulf %123, %123 : vector<16x16xf32>
    %140 = vector.shape_cast %139 : vector<16x16xf32> to vector<1x16x16xf32>
    %cst_81 = arith.constant dense<0.000000e+00> : vector<1xf32>
    %141 = vector.multi_reduction <add>, %140, %cst_81 [1, 2] : vector<1x16x16xf32> to vector<1xf32>
    %142 = vector.shape_cast %141 : vector<1xf32> to vector<1x1x1xf32>
    %143 = vector.extract %142[0, 0, 0] : f32 from vector<1x1x1xf32>
    %c1_82 = arith.constant 1 : index
    %c0_83 = arith.constant 0 : index
    %144 = memref.load %arg5[%c1_82, %c0_83] : memref<4x4xf32, #tpu.memory_space<smem>>
    %145 = arith.addf %144, %127 : f32
    %c1_84 = arith.constant 1 : index
    %c0_85 = arith.constant 0 : index
    %146 = memref.load %arg5[%c1_84, %c0_85] : memref<4x4xf32, #tpu.memory_space<smem>>
    memref.store %145, %arg5[%c1_84, %c0_85] : memref<4x4xf32, #tpu.memory_space<smem>>
    %c1_86 = arith.constant 1 : index
    %c1_87 = arith.constant 1 : index
    %147 = memref.load %arg5[%c1_86, %c1_87] : memref<4x4xf32, #tpu.memory_space<smem>>
    %148 = arith.addf %147, %133 : f32
    %c1_88 = arith.constant 1 : index
    %c1_89 = arith.constant 1 : index
    %149 = memref.load %arg5[%c1_88, %c1_89] : memref<4x4xf32, #tpu.memory_space<smem>>
    memref.store %148, %arg5[%c1_88, %c1_89] : memref<4x4xf32, #tpu.memory_space<smem>>
    %c1_90 = arith.constant 1 : index
    %c2_91 = arith.constant 2 : index
    %150 = memref.load %arg5[%c1_90, %c2_91] : memref<4x4xf32, #tpu.memory_space<smem>>
    %151 = arith.addf %150, %138 : f32
    %c1_92 = arith.constant 1 : index
    %c2_93 = arith.constant 2 : index
    %152 = memref.load %arg5[%c1_92, %c2_93] : memref<4x4xf32, #tpu.memory_space<smem>>
    memref.store %151, %arg5[%c1_92, %c2_93] : memref<4x4xf32, #tpu.memory_space<smem>>
    %c1_94 = arith.constant 1 : index
    %c3_95 = arith.constant 3 : index
    %153 = memref.load %arg5[%c1_94, %c3_95] : memref<4x4xf32, #tpu.memory_space<smem>>
    %154 = arith.addf %153, %143 : f32
    %c1_96 = arith.constant 1 : index
    %c3_97 = arith.constant 3 : index
    %155 = memref.load %arg5[%c1_96, %c3_97] : memref<4x4xf32, #tpu.memory_space<smem>>
    memref.store %154, %arg5[%c1_96, %c3_97] : memref<4x4xf32, #tpu.memory_space<smem>>
    %c2_i32 = arith.constant 2 : i32
    %156 = vector.broadcast %c2_i32 : i32 to vector<16x16xi32>
    %157 = arith.cmpi eq, %4, %156 : vector<16x16xi32>
    %158 = arith.extui %157 : vector<16x16xi1> to vector<16x16xi32>
    %159 = arith.sitofp %158 : vector<16x16xi32> to vector<16x16xf32>
    %c2_98 = arith.constant 2 : index
    %c0_99 = arith.constant 0 : index
    %c0_100 = arith.constant 0 : index
    %160 = vector.load %arg4[%c2_98, %c0_99, %c0_100] : memref<4x16x16xf32, #tpu.memory_space<vmem>>, vector<1x16x16xf32>
    %161 = vector.shape_cast %160 : vector<1x16x16xf32> to vector<16x16xf32>
    %162 = arith.mulf %161, %49 : vector<16x16xf32>
    %163 = vector.shape_cast %159 : vector<16x16xf32> to vector<1x16x16xf32>
    %cst_101 = arith.constant dense<0.000000e+00> : vector<1xf32>
    %164 = vector.multi_reduction <add>, %163, %cst_101 [1, 2] : vector<1x16x16xf32> to vector<1xf32>
    %165 = vector.shape_cast %164 : vector<1xf32> to vector<1x1x1xf32>
    %166 = vector.extract %165[0, 0, 0] : f32 from vector<1x1x1xf32>
    %167 = arith.mulf %159, %77 : vector<16x16xf32>
    %168 = vector.shape_cast %167 : vector<16x16xf32> to vector<1x16x16xf32>
    %cst_102 = arith.constant dense<0.000000e+00> : vector<1xf32>
    %169 = vector.multi_reduction <add>, %168, %cst_102 [1, 2] : vector<1x16x16xf32> to vector<1xf32>
    %170 = vector.shape_cast %169 : vector<1xf32> to vector<1x1x1xf32>
    %171 = vector.extract %170[0, 0, 0] : f32 from vector<1x1x1xf32>
    %172 = arith.subf %166, %171 : f32
    %173 = arith.mulf %162, %159 : vector<16x16xf32>
    %174 = vector.shape_cast %173 : vector<16x16xf32> to vector<1x16x16xf32>
    %cst_103 = arith.constant dense<0.000000e+00> : vector<1xf32>
    %175 = vector.multi_reduction <add>, %174, %cst_103 [1, 2] : vector<1x16x16xf32> to vector<1xf32>
    %176 = vector.shape_cast %175 : vector<1xf32> to vector<1x1x1xf32>
    %177 = vector.extract %176[0, 0, 0] : f32 from vector<1x1x1xf32>
    %178 = arith.mulf %162, %162 : vector<16x16xf32>
    %179 = vector.shape_cast %178 : vector<16x16xf32> to vector<1x16x16xf32>
    %cst_104 = arith.constant dense<0.000000e+00> : vector<1xf32>
    %180 = vector.multi_reduction <add>, %179, %cst_104 [1, 2] : vector<1x16x16xf32> to vector<1xf32>
    %181 = vector.shape_cast %180 : vector<1xf32> to vector<1x1x1xf32>
    %182 = vector.extract %181[0, 0, 0] : f32 from vector<1x1x1xf32>
    %c2_105 = arith.constant 2 : index
    %c0_106 = arith.constant 0 : index
    %183 = memref.load %arg5[%c2_105, %c0_106] : memref<4x4xf32, #tpu.memory_space<smem>>
    %184 = arith.addf %183, %166 : f32
    %c2_107 = arith.constant 2 : index
    %c0_108 = arith.constant 0 : index
    %185 = memref.load %arg5[%c2_107, %c0_108] : memref<4x4xf32, #tpu.memory_space<smem>>
    memref.store %184, %arg5[%c2_107, %c0_108] : memref<4x4xf32, #tpu.memory_space<smem>>
    %c2_109 = arith.constant 2 : index
    %c1_110 = arith.constant 1 : index
    %186 = memref.load %arg5[%c2_109, %c1_110] : memref<4x4xf32, #tpu.memory_space<smem>>
    %187 = arith.addf %186, %172 : f32
    %c2_111 = arith.constant 2 : index
    %c1_112 = arith.constant 1 : index
    %188 = memref.load %arg5[%c2_111, %c1_112] : memref<4x4xf32, #tpu.memory_space<smem>>
    memref.store %187, %arg5[%c2_111, %c1_112] : memref<4x4xf32, #tpu.memory_space<smem>>
    %c2_113 = arith.constant 2 : index
    %c2_114 = arith.constant 2 : index
    %189 = memref.load %arg5[%c2_113, %c2_114] : memref<4x4xf32, #tpu.memory_space<smem>>
    %190 = arith.addf %189, %177 : f32
    %c2_115 = arith.constant 2 : index
    %c2_116 = arith.constant 2 : index
    %191 = memref.load %arg5[%c2_115, %c2_116] : memref<4x4xf32, #tpu.memory_space<smem>>
    memref.store %190, %arg5[%c2_115, %c2_116] : memref<4x4xf32, #tpu.memory_space<smem>>
    %c2_117 = arith.constant 2 : index
    %c3_118 = arith.constant 3 : index
    %192 = memref.load %arg5[%c2_117, %c3_118] : memref<4x4xf32, #tpu.memory_space<smem>>
    %193 = arith.addf %192, %182 : f32
    %c2_119 = arith.constant 2 : index
    %c3_120 = arith.constant 3 : index
    %194 = memref.load %arg5[%c2_119, %c3_120] : memref<4x4xf32, #tpu.memory_space<smem>>
    memref.store %193, %arg5[%c2_119, %c3_120] : memref<4x4xf32, #tpu.memory_space<smem>>
    %c3_i32 = arith.constant 3 : i32
    %195 = vector.broadcast %c3_i32 : i32 to vector<16x16xi32>
    %196 = arith.cmpi eq, %4, %195 : vector<16x16xi32>
    %197 = arith.extui %196 : vector<16x16xi1> to vector<16x16xi32>
    %198 = arith.sitofp %197 : vector<16x16xi32> to vector<16x16xf32>
    %c3_121 = arith.constant 3 : index
    %c0_122 = arith.constant 0 : index
    %c0_123 = arith.constant 0 : index
    %199 = vector.load %arg4[%c3_121, %c0_122, %c0_123] : memref<4x16x16xf32, #tpu.memory_space<vmem>>, vector<1x16x16xf32>
    %200 = vector.shape_cast %199 : vector<1x16x16xf32> to vector<16x16xf32>
    %201 = arith.mulf %200, %49 : vector<16x16xf32>
    %202 = vector.shape_cast %198 : vector<16x16xf32> to vector<1x16x16xf32>
    %cst_124 = arith.constant dense<0.000000e+00> : vector<1xf32>
    %203 = vector.multi_reduction <add>, %202, %cst_124 [1, 2] : vector<1x16x16xf32> to vector<1xf32>
    %204 = vector.shape_cast %203 : vector<1xf32> to vector<1x1x1xf32>
    %205 = vector.extract %204[0, 0, 0] : f32 from vector<1x1x1xf32>
    %206 = arith.mulf %198, %77 : vector<16x16xf32>
    %207 = vector.shape_cast %206 : vector<16x16xf32> to vector<1x16x16xf32>
    %cst_125 = arith.constant dense<0.000000e+00> : vector<1xf32>
    %208 = vector.multi_reduction <add>, %207, %cst_125 [1, 2] : vector<1x16x16xf32> to vector<1xf32>
    %209 = vector.shape_cast %208 : vector<1xf32> to vector<1x1x1xf32>
    %210 = vector.extract %209[0, 0, 0] : f32 from vector<1x1x1xf32>
    %211 = arith.subf %205, %210 : f32
    %212 = arith.mulf %201, %198 : vector<16x16xf32>
    %213 = vector.shape_cast %212 : vector<16x16xf32> to vector<1x16x16xf32>
    %cst_126 = arith.constant dense<0.000000e+00> : vector<1xf32>
    %214 = vector.multi_reduction <add>, %213, %cst_126 [1, 2] : vector<1x16x16xf32> to vector<1xf32>
    %215 = vector.shape_cast %214 : vector<1xf32> to vector<1x1x1xf32>
    %216 = vector.extract %215[0, 0, 0] : f32 from vector<1x1x1xf32>
    %217 = arith.mulf %201, %201 : vector<16x16xf32>
    %218 = vector.shape_cast %217 : vector<16x16xf32> to vector<1x16x16xf32>
    %cst_127 = arith.constant dense<0.000000e+00> : vector<1xf32>
    %219 = vector.multi_reduction <add>, %218, %cst_127 [1, 2] : vector<1x16x16xf32> to vector<1xf32>
    %220 = vector.shape_cast %219 : vector<1xf32> to vector<1x1x1xf32>
    %221 = vector.extract %220[0, 0, 0] : f32 from vector<1x1x1xf32>
    %c3_128 = arith.constant 3 : index
    %c0_129 = arith.constant 0 : index
    %222 = memref.load %arg5[%c3_128, %c0_129] : memref<4x4xf32, #tpu.memory_space<smem>>
    %223 = arith.addf %222, %205 : f32
    %c3_130 = arith.constant 3 : index
    %c0_131 = arith.constant 0 : index
    %224 = memref.load %arg5[%c3_130, %c0_131] : memref<4x4xf32, #tpu.memory_space<smem>>
    memref.store %223, %arg5[%c3_130, %c0_131] : memref<4x4xf32, #tpu.memory_space<smem>>
    %c3_132 = arith.constant 3 : index
    %c1_133 = arith.constant 1 : index
    %225 = memref.load %arg5[%c3_132, %c1_133] : memref<4x4xf32, #tpu.memory_space<smem>>
    %226 = arith.addf %225, %211 : f32
    %c3_134 = arith.constant 3 : index
    %c1_135 = arith.constant 1 : index
    %227 = memref.load %arg5[%c3_134, %c1_135] : memref<4x4xf32, #tpu.memory_space<smem>>
    memref.store %226, %arg5[%c3_134, %c1_135] : memref<4x4xf32, #tpu.memory_space<smem>>
    %c3_136 = arith.constant 3 : index
    %c2_137 = arith.constant 2 : index
    %228 = memref.load %arg5[%c3_136, %c2_137] : memref<4x4xf32, #tpu.memory_space<smem>>
    %229 = arith.addf %228, %216 : f32
    %c3_138 = arith.constant 3 : index
    %c2_139 = arith.constant 2 : index
    %230 = memref.load %arg5[%c3_138, %c2_139] : memref<4x4xf32, #tpu.memory_space<smem>>
    memref.store %229, %arg5[%c3_138, %c2_139] : memref<4x4xf32, #tpu.memory_space<smem>>
    %c3_140 = arith.constant 3 : index
    %c3_141 = arith.constant 3 : index
    %231 = memref.load %arg5[%c3_140, %c3_141] : memref<4x4xf32, #tpu.memory_space<smem>>
    %232 = arith.addf %231, %221 : f32
    %c3_142 = arith.constant 3 : index
    %c3_143 = arith.constant 3 : index
    %233 = memref.load %arg5[%c3_142, %c3_143] : memref<4x4xf32, #tpu.memory_space<smem>>
    memref.store %232, %arg5[%c3_142, %c3_143] : memref<4x4xf32, #tpu.memory_space<smem>>
    %c1_i32_144 = arith.constant 1 : i32
    %234 = arith.cmpi eq, %arg0, %c1_i32_144 : i32
    %235 = arith.extui %234 : i1 to i32
    %c0_i32_145 = arith.constant 0 : i32
    %236 = arith.cmpi ne, %235, %c0_i32_145 : i32
    scf.if %236 {
      %c0_146 = arith.constant 0 : index
      %c0_147 = arith.constant 0 : index
      %237 = memref.load %arg5[%c0_146, %c0_147] : memref<4x4xf32, #tpu.memory_space<smem>>
      %c0_148 = arith.constant 0 : index
      %c1_149 = arith.constant 1 : index
      %238 = memref.load %arg5[%c0_148, %c1_149] : memref<4x4xf32, #tpu.memory_space<smem>>
      %c0_150 = arith.constant 0 : index
      %c2_151 = arith.constant 2 : index
      %239 = memref.load %arg5[%c0_150, %c2_151] : memref<4x4xf32, #tpu.memory_space<smem>>
      %c0_152 = arith.constant 0 : index
      %c3_153 = arith.constant 3 : index
      %240 = memref.load %arg5[%c0_152, %c3_153] : memref<4x4xf32, #tpu.memory_space<smem>>
      %cst_154 = arith.constant 9.99999974E-6 : f32
      %241 = arith.addf %238, %cst_154 : f32
      %cst_155 = arith.constant 9.99999974E-6 : f32
      %242 = arith.addf %237, %cst_155 : f32
      %243 = arith.divf %241, %242 : f32
      %cst_156 = arith.constant 1.000000e+00 : f32
      %244 = arith.subf %cst_156, %243 : f32
      %cst_157 = arith.constant 2.000000e+00 : f32
      %245 = arith.mulf %cst_157, %244 : f32
      %cst_158 = arith.constant 1.000000e+00 : f32
      %246 = arith.subf %245, %cst_158 : f32
      %cst_159 = arith.constant 8.000000e-01 : f32
      %247 = arith.minimumf %246, %cst_159 : f32
      %248 = arith.addf %240, %237 : f32
      %cst_160 = arith.constant 2.000000e+00 : f32
      %249 = arith.mulf %cst_160, %239 : f32
      %250 = arith.subf %248, %249 : f32
      %cst_161 = arith.constant 9.99999974E-6 : f32
      %251 = arith.addf %250, %cst_161 : f32
      %252 = arith.addf %240, %237 : f32
      %cst_162 = arith.constant 1.000000e+00 : f32
      %253 = arith.addf %cst_162, %247 : f32
      %254 = arith.mulf %253, %239 : f32
      %255 = arith.subf %252, %254 : f32
      %cst_163 = arith.constant 9.99999974E-6 : f32
      %256 = arith.addf %255, %cst_163 : f32
      %257 = arith.divf %251, %256 : f32
      %cst_164 = arith.constant 0.000000e+00 : f32
      %258 = arith.addf %cst_164, %257 : f32
      %c1_165 = arith.constant 1 : index
      %c0_166 = arith.constant 0 : index
      %259 = memref.load %arg5[%c1_165, %c0_166] : memref<4x4xf32, #tpu.memory_space<smem>>
      %c1_167 = arith.constant 1 : index
      %c1_168 = arith.constant 1 : index
      %260 = memref.load %arg5[%c1_167, %c1_168] : memref<4x4xf32, #tpu.memory_space<smem>>
      %c1_169 = arith.constant 1 : index
      %c2_170 = arith.constant 2 : index
      %261 = memref.load %arg5[%c1_169, %c2_170] : memref<4x4xf32, #tpu.memory_space<smem>>
      %c1_171 = arith.constant 1 : index
      %c3_172 = arith.constant 3 : index
      %262 = memref.load %arg5[%c1_171, %c3_172] : memref<4x4xf32, #tpu.memory_space<smem>>
      %cst_173 = arith.constant 9.99999974E-6 : f32
      %263 = arith.addf %260, %cst_173 : f32
      %cst_174 = arith.constant 9.99999974E-6 : f32
      %264 = arith.addf %259, %cst_174 : f32
      %265 = arith.divf %263, %264 : f32
      %cst_175 = arith.constant 1.000000e+00 : f32
      %266 = arith.subf %cst_175, %265 : f32
      %cst_176 = arith.constant 2.000000e+00 : f32
      %267 = arith.mulf %cst_176, %266 : f32
      %cst_177 = arith.constant 1.000000e+00 : f32
      %268 = arith.subf %267, %cst_177 : f32
      %cst_178 = arith.constant 8.000000e-01 : f32
      %269 = arith.minimumf %268, %cst_178 : f32
      %270 = arith.addf %262, %259 : f32
      %cst_179 = arith.constant 2.000000e+00 : f32
      %271 = arith.mulf %cst_179, %261 : f32
      %272 = arith.subf %270, %271 : f32
      %cst_180 = arith.constant 9.99999974E-6 : f32
      %273 = arith.addf %272, %cst_180 : f32
      %274 = arith.addf %262, %259 : f32
      %cst_181 = arith.constant 1.000000e+00 : f32
      %275 = arith.addf %cst_181, %269 : f32
      %276 = arith.mulf %275, %261 : f32
      %277 = arith.subf %274, %276 : f32
      %cst_182 = arith.constant 9.99999974E-6 : f32
      %278 = arith.addf %277, %cst_182 : f32
      %279 = arith.divf %273, %278 : f32
      %280 = arith.addf %258, %279 : f32
      %c2_183 = arith.constant 2 : index
      %c0_184 = arith.constant 0 : index
      %281 = memref.load %arg5[%c2_183, %c0_184] : memref<4x4xf32, #tpu.memory_space<smem>>
      %c2_185 = arith.constant 2 : index
      %c1_186 = arith.constant 1 : index
      %282 = memref.load %arg5[%c2_185, %c1_186] : memref<4x4xf32, #tpu.memory_space<smem>>
      %c2_187 = arith.constant 2 : index
      %c2_188 = arith.constant 2 : index
      %283 = memref.load %arg5[%c2_187, %c2_188] : memref<4x4xf32, #tpu.memory_space<smem>>
      %c2_189 = arith.constant 2 : index
      %c3_190 = arith.constant 3 : index
      %284 = memref.load %arg5[%c2_189, %c3_190] : memref<4x4xf32, #tpu.memory_space<smem>>
      %cst_191 = arith.constant 9.99999974E-6 : f32
      %285 = arith.addf %282, %cst_191 : f32
      %cst_192 = arith.constant 9.99999974E-6 : f32
      %286 = arith.addf %281, %cst_192 : f32
      %287 = arith.divf %285, %286 : f32
      %cst_193 = arith.constant 1.000000e+00 : f32
      %288 = arith.subf %cst_193, %287 : f32
      %cst_194 = arith.constant 2.000000e+00 : f32
      %289 = arith.mulf %cst_194, %288 : f32
      %cst_195 = arith.constant 1.000000e+00 : f32
      %290 = arith.subf %289, %cst_195 : f32
      %cst_196 = arith.constant 8.000000e-01 : f32
      %291 = arith.minimumf %290, %cst_196 : f32
      %292 = arith.addf %284, %281 : f32
      %cst_197 = arith.constant 2.000000e+00 : f32
      %293 = arith.mulf %cst_197, %283 : f32
      %294 = arith.subf %292, %293 : f32
      %cst_198 = arith.constant 9.99999974E-6 : f32
      %295 = arith.addf %294, %cst_198 : f32
      %296 = arith.addf %284, %281 : f32
      %cst_199 = arith.constant 1.000000e+00 : f32
      %297 = arith.addf %cst_199, %291 : f32
      %298 = arith.mulf %297, %283 : f32
      %299 = arith.subf %296, %298 : f32
      %cst_200 = arith.constant 9.99999974E-6 : f32
      %300 = arith.addf %299, %cst_200 : f32
      %301 = arith.divf %295, %300 : f32
      %302 = arith.addf %280, %301 : f32
      %c3_201 = arith.constant 3 : index
      %c0_202 = arith.constant 0 : index
      %303 = memref.load %arg5[%c3_201, %c0_202] : memref<4x4xf32, #tpu.memory_space<smem>>
      %c3_203 = arith.constant 3 : index
      %c1_204 = arith.constant 1 : index
      %304 = memref.load %arg5[%c3_203, %c1_204] : memref<4x4xf32, #tpu.memory_space<smem>>
      %c3_205 = arith.constant 3 : index
      %c2_206 = arith.constant 2 : index
      %305 = memref.load %arg5[%c3_205, %c2_206] : memref<4x4xf32, #tpu.memory_space<smem>>
      %c3_207 = arith.constant 3 : index
      %c3_208 = arith.constant 3 : index
      %306 = memref.load %arg5[%c3_207, %c3_208] : memref<4x4xf32, #tpu.memory_space<smem>>
      %cst_209 = arith.constant 9.99999974E-6 : f32
      %307 = arith.addf %304, %cst_209 : f32
      %cst_210 = arith.constant 9.99999974E-6 : f32
      %308 = arith.addf %303, %cst_210 : f32
      %309 = arith.divf %307, %308 : f32
      %cst_211 = arith.constant 1.000000e+00 : f32
      %310 = arith.subf %cst_211, %309 : f32
      %cst_212 = arith.constant 2.000000e+00 : f32
      %311 = arith.mulf %cst_212, %310 : f32
      %cst_213 = arith.constant 1.000000e+00 : f32
      %312 = arith.subf %311, %cst_213 : f32
      %cst_214 = arith.constant 8.000000e-01 : f32
      %313 = arith.minimumf %312, %cst_214 : f32
      %314 = arith.addf %306, %303 : f32
      %cst_215 = arith.constant 2.000000e+00 : f32
      %315 = arith.mulf %cst_215, %305 : f32
      %316 = arith.subf %314, %315 : f32
      %cst_216 = arith.constant 9.99999974E-6 : f32
      %317 = arith.addf %316, %cst_216 : f32
      %318 = arith.addf %306, %303 : f32
      %cst_217 = arith.constant 1.000000e+00 : f32
      %319 = arith.addf %cst_217, %313 : f32
      %320 = arith.mulf %319, %305 : f32
      %321 = arith.subf %318, %320 : f32
      %cst_218 = arith.constant 9.99999974E-6 : f32
      %322 = arith.addf %321, %cst_218 : f32
      %323 = arith.divf %317, %322 : f32
      %324 = arith.addf %302, %323 : f32
      %cst_219 = arith.constant 4.000000e+00 : f32
      %325 = arith.divf %324, %cst_219 : f32
      %c0_220 = arith.constant 0 : index
      %c0_221 = arith.constant 0 : index
      %326 = memref.load %arg3[%c0_220, %c0_221] : memref<1x1xf32, #tpu.memory_space<smem>>
      memref.store %325, %arg3[%c0_220, %c0_221] : memref<1x1xf32, #tpu.memory_space<smem>>
    } else {
    }
    return
  }
  func.func @transform_0(%arg0: i32) -> (i32, i32, i32, i32) {
    %c0_i32 = arith.constant 0 : i32
    %c0_i32_0 = arith.constant 0 : i32
    %c0_i32_1 = arith.constant 0 : i32
    %c0_i32_2 = arith.constant 0 : i32
    return %arg0, %c0_i32, %c0_i32_0, %c0_i32_1 : i32, i32, i32, i32
  }
  func.func @transform_1(%arg0: i32) -> (i32, i32, i32) {
    %c0_i32 = arith.constant 0 : i32
    %c0_i32_0 = arith.constant 0 : i32
    %c0_i32_1 = arith.constant 0 : i32
    return %arg0, %c0_i32, %c0_i32_0 : i32, i32, i32
  }
  func.func @transform_2(%arg0: i32) -> (i32, i32) {
    %c0_i32 = arith.constant 0 : i32
    %c0_i32_0 = arith.constant 0 : i32
    %c0_i32_1 = arith.constant 0 : i32
    return %c0_i32, %c0_i32_0 : i32, i32
  }
}

</mosaic_0001>

<bundles_post_ra>
// kernel: tpu_custom_call.1
= control target key start
LH: loop header
LB: loop body
LE: loop exit
PB: predicated region body
PF: predicated region fallthrough
CT: control target
= control target key end

     0   :  { %s1709_s0 = inlined_call_operand.hbm [shape: f32[2,4,16,16], index: 0, kind: input, shape index: {}]   ;;  %s1710_s1 = inlined_call_operand.hbm [shape: s32[2,16,16], index: 1, kind: input, shape index: {}]   ;;  %s1711_s2 = inlined_call_operand.hbm [shape: f32[1,1], index: 2, kind: output, shape index: {}]  }
   0x1   :  { %1715 = sst [smem:[#allocation14_spill]] %s1709_s0 }
   0x2   :  { %1716 = sst [smem:[#allocation15_spill]] %s1710_s1 }
   0x3   :  { %7 = vsyncpa [#allocation5], 0 }
   0x4   :  { %9 = vsyncpa [#allocation5 + $0x1], 0 }
   0x5   :  { %10 = vsyncpa [#allocation8], 0 }
   0x6   :  { %12 = vsyncpa [#allocation8 + $0x1], 0 }
   0x7   :  { %13 = vsyncpa [#allocation6], 0  ;;  %s1294_s9 = smov 0   ;;  %s1296_s10 = smov 0  }
   0x8   :  { %s1298_s11 = smov 0   ;;  %s1300_s12 = smov 0  }
   0x9 LB: > { %s1313_s13 = sadd.s32 4294967295, %s1263_s12   ;;  %s1316_s14 = sadd.s32 1, %s1263_s12   ;;  %s1263_s12 = sphi %s1300_s12, %s1753_s12   ;;  %s1259_s11 = sphi %s1298_s11, %s1752_s11   ;;  %s1255_s10 = sphi %s1296_s10, %s1751_s10   ;;  %s1251_s9 = sphi %s1294_s9, %s1750_s9  }
   0xa   : > { %s23_s15 = ssub.s32 %s1263_s12, %s1316_s14  ;;  %s26_s16 = sadd.s32 1, %s1259_s11 }
   0xb   : > { %p24_p0 = scmp.eq.s32.totalorder %s23_s15, 0  ;;  %p33_p1 = scmp.ne.s32.totalorder %s1259_s11, %s1255_s10 }
   0xc   : > { %p34_p2 = scmp.eq.s32.totalorder %s1263_s12, 0  ;;  %p39_p3 = scmp.ne.s32.totalorder %s1255_s10, %s1251_s9 }
   0xd   : > { %s1326_s17 = scalar_select %p24_p0, %s1259_s11, %s26_s16  }
   0xe   : > { %p35_p4 = por %p34_p2, %p33_p1  ;;  %p1712_p5 = scmp.eq.s32.totalorder %s1313_s13, 0 }
   0xf   : > { %1717 = sst [smem:[#allocation13_spill]] %s1326_s17  ;;  %p1065_p6 = scmp.lt.s32.totalorder %s1263_s12, 2 }
  0x10   : > { %p1332_p7 = por %p1712_p5, %p39_p3  ;;  %s1337_s19 = sand.u32 1, %s1259_s11  }
  0x11   : > { %s912_s20 = sshll.u32 %s1337_s19, 6  ;;  %s983_s21 = sshll.u32 %s1263_s12, 10 }
  0x12   : > { %s1718_s18 = scalar_select %p1332_p7, 1, 0 }
  0x13   : > { %s1719_s0 = sld [smem:[#allocation14_spill]]  ;;  %s114_s25 = scalar_lea.vmem [#allocation4], %s912_s20 }
  0x14   : > { %s121_s26 = sshll.u32 %s114_s25, 4  ;;  %p1348_p8 = pnand %p1065_p6, %p35_p4  ;;  %s1346_s26 = int_to_ptr.vmem [resolvable:$true] %s121_s26 }
  0x15   : > { %s111_s28 = scalar_lea.sflag [#allocation5], %s1337_s19 }
  0x16   : > { %p1151_p11 = pneg %p1348_p8 }
  0x19   : > { %s1344_s24 = scalar_lea.hbm %s1719_s0, %s983_s21  ;;  %s1154_s4 = scalar_lea.hbm %s1719_s0, 2048 }
  0x1a   : > { %s1149_s29 = scalar_lea.hbm %s1344_s24, 1024  ;;  %p1155_p0 = scmp.lt.u32.totalorder %s1344_s24, %s1719_s0 }
  0x1b   : > { %p1150_p10 = scmp.ne.s32.totalorder %s1344_s24, %s1149_s29  ;;  %p1156_p1 = scmp.lt.u32.totalorder %s1154_s4, %s1149_s29 }
  0x1c   : > { %p1158_p3 = scmp.lt.u32.totalorder %s1149_s29, %s1344_s24 }
  0x1d   : > { %p1152_p12 = pnand %p1151_p11, %p1150_p10  ;;  %p1157_p2 = por %p1156_p1, %p1155_p0 }
  0x1f   : > { %p1153_p13 = pneg %p1152_p12  ;;  %p1159_p4 = por %p1158_p3, %p1157_p2 }
  0x21   : > { %p1160_p6 = pnand %p1159_p4, %p1153_p13 }
  0x23   : > { %1163 = shalt.err (!%p1160_p6)
}
  0x24   : > { %s1164_s7 = scalar_lea.vmem %s1346_s26, 1024  ;;  %s1265_s8 = smov [#allocation4]  }
  0x25   : > { %p1165_p10 = scmp.ne.s32.totalorder %s1346_s26, %s1164_s7  ;;  %s1169_s9 = sshll.u32 %s1265_s8, 4  ;;  %s1170_s9 = int_to_ptr.vmem [resolvable:$false] %s1169_s9 }
  0x26   : > { %s1171_s15 = scalar_lea.vmem %s1170_s9, 2048  ;;  %p1172_p9 = scmp.lt.s32.totalorder %s1346_s26, %s1170_s9 }
  0x27   : > { %p1167_p12 = pnand %p1165_p10, %p1151_p11  ;;  %p1173_p0 = scmp.lt.s32.totalorder %s1171_s15, %s1164_s7 }
  0x29   : > { %p1168_p5 = pneg %p1167_p12  ;;  %p1174_p1 = por %p1173_p0, %p1172_p9 }
  0x2b   : > { %p1175_p2 = pnand %p1174_p1, %p1168_p5 }
  0x2d   : > { %1178 = shalt.err (!%p1175_p2)
}
  0x2e   : > { %s1266_s16 = smov 128   ;;  %s1267_s20 = smov 8  }
  0x2f   : > { %1061 = dma.hbm_to_vmem [thread:$0]  (!%p1348_p8), %s1344_s24, 1024, %s1346_s26, %s111_s28, %s1266_s16, %s1266_s16, %s1267_s20  }
  0x30   : > { %p150_p5 = scmp.lt.s32.totalorder %s1263_s12, 3  ;;  %s915_s21 = sshll.u32 %s1337_s19, 4 }
  0x31   : > { %s984_s22 = sshll.u32 %s1263_s12, 8  ;;  %p1721_p9 = scmp.ge.s32.totalorder %s1263_s12, 1 }
  0x32   : > { %s1723_s1 = sld [smem:[#allocation15_spill]]  ;;  %s135_s3 = scalar_lea.vmem [#allocation7], %s915_s21 }
  0x33   : > { %p1389_p13 = pnand %p1721_p9, %p150_p5  ;;  %s142_s4 = sshll.u32 %s135_s3, 4  ;;  %s1398_s4 = int_to_ptr.vmem [resolvable:$true] %s142_s4 }
  0x34   : > { %s132_s24 = scalar_lea.sflag [#allocation8], %s1337_s19 }
  0x38   : > { %s1396_s30 = scalar_lea.hbm %s1723_s1, %s984_s22  ;;  %s1184_s5 = scalar_lea.hbm %s1723_s1, 512 }
  0x39   : > { %s1179_s26 = scalar_lea.hbm %s1396_s30, 256  ;;  %p1185_p10 = scmp.lt.u32.totalorder %s1396_s30, %s1723_s1 }
  0x3a   : > { %p1180_p3 = scmp.ne.s32.totalorder %s1396_s30, %s1179_s26  ;;  %p1186_p12 = scmp.lt.u32.totalorder %s1184_s5, %s1179_s26 }
  0x3b   : > { %p1188_p1 = scmp.lt.u32.totalorder %s1179_s26, %s1396_s30 }
  0x3c   : > { %p1182_p4 = pnand %p1180_p3, %p1151_p11  ;;  %p1187_p0 = por %p1186_p12, %p1185_p10 }
  0x3e   : > { %p1183_p6 = pneg %p1182_p4  ;;  %p1189_p2 = por %p1188_p1, %p1187_p0 }
  0x40   : > { %p1190_p5 = pnand %p1189_p2, %p1183_p6 }
  0x42   : > { %1193 = shalt.err (!%p1190_p5)
}
  0x43   : > { %s1194_s8 = scalar_lea.vmem %s1398_s4, 256  ;;  %s1268_s9 = smov [#allocation7]  }
  0x44   : > { %p1195_p9 = scmp.ne.s32.totalorder %s1398_s4, %s1194_s8  ;;  %s1199_s15 = sshll.u32 %s1268_s9, 4  ;;  %s1200_s15 = int_to_ptr.vmem [resolvable:$false] %s1199_s15 }
  0x45   : > { %s1201_s21 = scalar_lea.vmem %s1200_s15, 512  ;;  %p1202_p7 = scmp.lt.s32.totalorder %s1398_s4, %s1200_s15 }
  0x46   : > { %p1197_p3 = pnand %p1195_p9, %p1151_p11  ;;  %p1203_p10 = scmp.lt.s32.totalorder %s1201_s21, %s1194_s8 }
  0x48   : > { %p1198_p4 = pneg %p1197_p3  ;;  %p1204_p12 = por %p1203_p10, %p1202_p7 }
  0x4a   : > { %p1205_p0 = pnand %p1204_p12, %p1198_p4 }
  0x4c   : > { %1208 = shalt.err (!%p1205_p0)
}
  0x4d   : > { %1064 = dma.hbm_to_vmem [thread:$0]  (!%p1348_p8), %s1396_s30, 256, %s1398_s4, %s132_s24, %s1266_s16, %s1266_s16, %s1267_s20  }
  0x4e   : > { %154 = sbr.rel (%p1389_p13) target bundleno = 1100 (0x44c), region = 28  ;;  %s156_s22 = sand.u32 (!%p1389_p13), 1, %s1255_s10  }
  0x4f   : > { %s919_s25 = sshll.u32 (!%p1389_p13), %s156_s22, 6  ;;  %s157_s29 = scalar_lea.sflag (!%p1389_p13), [#allocation5], %s156_s22 }
  0x50   : > { %s1432_s3 = scalar_lea.vmem (!%p1389_p13), [#allocation4], %s919_s25  ;;  %p1724_p7 = scmp.ne.s32.totalorder (!%p1389_p13), %s1718_s18, 0 }
  0x55   : > { %1238 = dma.done.wait (%p1724_p7), %s157_s29, 1024  }
  0x56   : > { %1240 = vsyncadd (%p1724_p7), %s157_s29, 4294966272  ;;  %s920_s19 = sshll.u32 %s156_s22, 4  ;;  %s166_s27 = scalar_lea.sflag [#allocation8], %s156_s22 }
  0x57   : > { %s169_s26 = scalar_lea.vmem [#allocation7], %s920_s19 }
  0x58   : > { %1242 = dma.done.wait (%p1724_p7), %s166_s27, 256  }
  0x59   : > { %1244 = vsyncadd (%p1724_p7), %s166_s27, 4294967040  ;;  %v1442_v0 = vld [vmem:[%s169_s26] sm:$0xff]  ;;  %v1444_v1 = vld [vmem:[%s169_s26 + $0x8] sm:$0xff]  ;;  %s1269_s16 = smov 16   ;;  %s1270_s20 = smov 15   ;;  %vm326_vm0 = vcmask 1047680  }
  0x5a   : > { %v1447_v2 = vcvt.s32.f32 %v1442_v0  ;;  %v1450_v3 = vcvt.s32.f32 %v1444_v1  ;;  %s1271_s18 = smov 1   ;;  %v228_v8 = vld [vmem:[%s1432_s3] sm:$0xff]  ;;  %v229_v9 = vld [vmem:[%s1432_s3 + $0x8] sm:$0xff]  ;;  %v922_v10 = vld [vmem:[%s1432_s3 + $0x10] sm:$0xff]  ;;  %vm1714_vm1 = vcmask 130048   ;;  %vm389_vm2 = vcmp.eq.s32.totalorder %v1442_v0, 0 }
  0x5b   : > { %v923_v11 = vld [vmem:[%s1432_s3 + $0x18] sm:$0xff]  ;;  %v233_v12 = vmax.f32 %v228_v8, %v922_v10  ;;  %v924_v13 = vld [vmem:[%s1432_s3 + $0x20] sm:$0xff]  ;;  %v925_v14 = vld [vmem:[%s1432_s3 + $0x28] sm:$0xff]  ;;  %vm390_vm3 = vcmp.eq.s32.totalorder %v1444_v1, 0  ;;  %v1272_v57 = vmov 0.0   ;;  %vm470_vm4 = vcmp.eq.s32.totalorder %v1442_v0, 1 }
  0x5c   : > { %327 = vrot.lane.b32.xlu0 %v1447_v2, %s1269_s16  ;;  %349 = vrot.lane.b32.xlu1 %v1450_v3, %s1270_s20  ;;  %v234_v15 = vmax.f32 %v229_v9, %v923_v11  ;;  %v926_v16 = vld [vmem:[%s1432_s3 + $0x30] sm:$0xff]  ;;  %v927_v18 = vld [vmem:[%s1432_s3 + $0x38] sm:$0xff]  ;;  %v1486_v58 = vsel %vm389_vm2, 1.0, %v1272_v57  ;;  %v1490_v60 = vsel %vm390_vm3, 1.0, %v1272_v57  ;;  %vm471_vm5 = vcmp.eq.s32.totalorder %v1444_v1, 1  ;;  %s1274_s23 = smov 113  }
  0x5d   : > { %v238_v17 = vmax.f32 %v233_v12, %v924_v13  ;;  %vm551_vm6 = vcmp.eq.s32.totalorder %v1442_v0, 2  ;;  %vm552_vm7 = vcmp.eq.s32.totalorder %v1444_v1, 2  ;;  %vm632_vm11 = vcmp.eq.s32.totalorder %v1442_v0, 3  ;;  %s1275_s30 = smov 127   ;;  %s1276_s4 = smov 0.0  }
  0x5e   : > { %v239_v19 = vmax.f32 %v234_v15, %v925_v14  ;;  %v1507_v15 = vsel %vm470_vm4, 1.0, %v1272_v57  ;;  %vm633_vm12 = vcmp.eq.s32.totalorder %v1444_v1, 3  ;;  %p1733_p8 = scmp.eq.s32.totalorder %s1313_s13, 0 }
  0x5f   : > { %v243_v20 = vmax.f32 %v238_v17, %v926_v16  ;;  %v1550_v0 = vsel %vm633_vm12, 1.0, %v1272_v57 }
  0x60   : > { %330 = vrot.lane.b32.xlu0 %v1450_v3, %s1269_s16  ;;  %v244_v21 = vmax.f32 %v239_v19, %v927_v18  ;;  %1038 = sst [smem:[#allocation3]] (%p1733_p8), %s1276_s4  ;;  %p1734_p11 = pmov %p1733_p8 }
  0x61   : > { %v245_v22 = vsub.f32 %v228_v8, %v243_v20  ;;  %v258_v23 = vsub.f32 %v922_v10, %v243_v20  ;;  %v271_v24 = vsub.f32 %v924_v13, %v243_v20  ;;  %v284_v30 = vsub.f32 %v926_v16, %v243_v20  ;;  %p1735_p13 = pmov %p1733_p8  ;;  %p1736_p6 = pmov %p1733_p8 }
  0x62   : > { %v246_v25 = vsub.f32 %v229_v9, %v244_v21  ;;  %v259_v26 = vsub.f32 %v923_v11, %v244_v21  ;;  %v272_v27 = vsub.f32 %v925_v14, %v244_v21  ;;  %v285_v33 = vsub.f32 %v927_v18, %v244_v21  ;;  %1039 = sst [smem:[#allocation3 + $0x1]] (%p1734_p11), %s1276_s4  ;;  %s454_s24 = sld [smem:[#allocation3]] }
  0x63   : > { %v247_v28 = vmul.f32 1.442695, %v245_v22  ;;  %v260_v29 = vmul.f32 1.442695, %v258_v23  ;;  %v273_v34 = vmul.f32 1.442695, %v271_v24  ;;  %p1737_p1 = pmov %p1736_p6 }
  0x64   : > { %347 = vrot.lane.b32.xlu0 %v1447_v2, %s1270_s20  ;;  %v249_v31 = vmul.f32 1.442695, %v246_v25  ;;  %v262_v32 = vmul.f32 1.442695, %v259_v26  ;;  %v275_v35 = vmul.f32 1.442695, %v272_v27 }
  0x65   : > { %1113 = vpow2.f32 %v247_v28  ;;  %v286_v36 = vmul.f32 1.442695, %v284_v30  ;;  %v288_v37 = vmul.f32 1.442695, %v285_v33  ;;  %v1510_v16 = vsel %vm471_vm5, 1.0, %v1272_v57  ;;  %1040 = sst [smem:[#allocation3 + $0x2]] (%p1735_p13), %s1276_s4  ;;  %p1738_p2 = pmov %p1737_p1 }
  0x66   : > { %1115 = vpow2.f32 %v249_v31  ;;  %v1527_v33 = vsel %vm551_vm6, 1.0, %v1272_v57  ;;  %1041 = sst [smem:[#allocation3 + $0x3]] (%p1736_p6), %s1276_s4  ;;  %p1739_p5 = pmov %p1737_p1 }
  0x67   : > { %1117 = vpow2.f32 %v260_v29  ;;  %1042 = sst [smem:[#allocation3 + $0x80]] (%p1737_p1), %s1276_s4  ;;  %p1740_p9 = pmov %p1737_p1 }
  0x68   : > { %365 = vrot.lane.b32.xlu0 %v1447_v2, %s1271_s18  ;;  %1119 = vpow2.f32 %v262_v32  ;;  %1043 = sst [smem:[#allocation3 + $0x81]] (%p1738_p2), %s1276_s4  ;;  %p1741_p3 = pmov %p1737_p1 }
  0x69   : > { %1121 = vpow2.f32 %v273_v34  ;;  %v1530_v34 = vsel %vm552_vm7, 1.0, %v1272_v57  ;;  %1044 = sst [smem:[#allocation3 + $0x82]] (%p1739_p5), %s1276_s4  ;;  %p1742_p4 = pmov %p1737_p1 }
  0x6a   : > { %1123 = vpow2.f32 %v275_v35  ;;  %1045 = sst [smem:[#allocation3 + $0x83]] (%p1740_p9), %s1276_s4  ;;  %p1743_p10 = pmov %p1737_p1 }
  0x6b   : > { %1125 = vpow2.f32 %v286_v36  ;;  %1046 = sst [smem:[#allocation3 + $0x100]] (%p1741_p3), %s1276_s4  ;;  %p1744_p12 = pmov %p1737_p1 }
  0x6c   : > { %1127 = vpow2.f32 %v288_v37  ;;  %1047 = sst [smem:[#allocation3 + $0x101]] (%p1742_p4), %s1276_s4  ;;  %p1745_p0 = pmov %p1737_p1 }
  0x6d   : > { %1048 = sst [smem:[#allocation3 + $0x102]] (%p1743_p10), %s1276_s4  ;;  %s938_s6 = sld [smem:[#allocation3 + $0x1]] }
  0x6e   : > { %1049 = sst [smem:[#allocation3 + $0x103]] (%p1744_p12), %s1276_s4  ;;  %p1746_p7 = pmov %p1745_p0 }
  0x6f   : > { %v1114_v38 = vpop.eup %1113  ;;  %1050 = sst [smem:[#allocation3 + $0x180]] (%p1745_p0), %s1276_s4  ;;  %p1747_p8 = pmov %p1745_p0 }
  0x70   : > { %v1116_v39 = vpop.eup %1115  ;;  %252 = vst.msk [vmem:[#allocation2] sm:$0xff] %vm1714_vm1, %v1114_v38  ;;  %1051 = sst [smem:[#allocation3 + $0x181]] (%p1746_p7), %s1276_s4  ;;  %p1748_p11 = pmov %p1745_p0 }
  0x71   : > { %v1118_v40 = vpop.eup %1117  ;;  %253 = vst.msk [vmem:[#allocation2 + $0x8] sm:$0xff] %vm1714_vm1, %v1116_v39  ;;  %1052 = sst [smem:[#allocation3 + $0x182]] (%p1747_p8), %s1276_s4  ;;  %s940_s7 = sld [smem:[#allocation3 + $0x3]] }
  0x72   : > { %v1120_v41 = vpop.eup %1119  ;;  %v267_v42 = vadd.f32 %v1118_v40, %v1114_v38  ;;  %265 = vst.msk [vmem:[#allocation2 + $0x10] sm:$0xff] %vm1714_vm1, %v1118_v40  ;;  %1053 = sst [smem:[#allocation3 + $0x183]] (%p1748_p11), %s1276_s4  ;;  %s939_s5 = sld [smem:[#allocation3 + $0x2]] }
  0x73   : > { %v1122_v43 = vpop.eup %1121  ;;  %v268_v44 = vadd.f32 %v1120_v41, %v1116_v39  ;;  %266 = vst.msk [vmem:[#allocation2 + $0x18] sm:$0xff] %vm1714_vm1, %v1120_v41  ;;  %s943_s8 = sld [smem:[#allocation3 + $0x80]]  ;;  %s945_s15 = sld [smem:[#allocation3 + $0x82]] }
  0x74   : > { %v1124_v45 = vpop.eup %1123  ;;  %v280_v46 = vadd.f32 %v1122_v43, %v267_v42  ;;  %278 = vst.msk [vmem:[#allocation2 + $0x20] sm:$0xff] %vm1714_vm1, %v1122_v43  ;;  %s944_s19 = sld [smem:[#allocation3 + $0x81]]  ;;  %s946_s26 = sld [smem:[#allocation3 + $0x83]] }
  0x75   : > { %v1126_v47 = vpop.eup %1125  ;;  %v281_v48 = vadd.f32 %v1124_v45, %v268_v44  ;;  %279 = vst.msk [vmem:[#allocation2 + $0x28] sm:$0xff] %vm1714_vm1, %v1124_v45  ;;  %p959_p13 = scmp.ne.s32.totalorder %s1313_s13, 1 }
  0x76   : > { %v1128_v49 = vpop.eup %1127  ;;  %v293_v50 = vadd.f32 %v1126_v47, %v280_v46  ;;  %291 = vst.msk [vmem:[#allocation2 + $0x30] sm:$0xff] %vm1714_vm1, %v1126_v47 }
  0x77   : > { %v294_v51 = vadd.f32 %v1128_v49, %v281_v48  ;;  %292 = vst.msk [vmem:[#allocation2 + $0x38] sm:$0xff] %vm1714_vm1, %v1128_v49  ;;  %v395_v52 = vld [vmem:[#allocation2] sm:$0xff]  ;;  %v1273_v48 = vmov 0  }
  0x78   : > { %1129 = vrcp.f32 %v293_v50  ;;  %v396_v53 = vld [vmem:[#allocation2 + $0x8] sm:$0xff] }
  0x79   : > { %1131 = vrcp.f32 %v294_v51  ;;  %v476_v11 = vld [vmem:[#allocation2 + $0x10] sm:$0xff] }
  0x7a   : > { %v477_v12 = vld [vmem:[#allocation2 + $0x18] sm:$0xff] }
  0x7b   : > { %v557_v26 = vld [vmem:[#allocation2 + $0x20] sm:$0xff] }
  0x7c   : > { %v558_v27 = vld [vmem:[#allocation2 + $0x28] sm:$0xff] }
  0x82   : > { %v1479_v54 = vpop.eup %1129 }
  0x83   : > { %v1482_v55 = vpop.eup %1131  ;;  %v397_v56 = vmul.f32 %v1479_v54, %v395_v52  ;;  %v478_v13 = vmul.f32 %v1479_v54, %v476_v11  ;;  %v559_v31 = vmul.f32 %v1479_v54, %v557_v26 }
  0x84   : > { %v398_v59 = vmul.f32 %v1482_v55, %v396_v53  ;;  %v479_v14 = vmul.f32 %v1482_v55, %v477_v12  ;;  %v560_v32 = vmul.f32 %v1482_v55, %v558_v27 }
  0x85   : > { %v426_v61 = vmul.f32 %v1486_v58, %v397_v56  ;;  %v440_v62 = vmul.f32 %v397_v56, %v397_v56  ;;  %v507_v17 = vmul.f32 %v1507_v15, %v478_v13  ;;  %v521_v22 = vmul.f32 %v478_v13, %v478_v13  ;;  %v638_v56 = vld [vmem:[#allocation2 + $0x30] sm:$0xff] }
  0x86   : > { %v427_v63 = vmul.f32 %v1490_v60, %v398_v59  ;;  %v508_v18 = vmul.f32 %v1510_v16, %v479_v14  ;;  %v522_v23 = vmul.f32 %v479_v14, %v479_v14  ;;  %v602_v35 = vmul.f32 %v559_v31, %v559_v31 }
  0x87   : > { %v509_v19 = vsel %vm1714_vm1, %v507_v17, 0.0  ;;  %v523_v24 = vsel %vm1714_vm1, %v521_v22, 0.0  ;;  %v603_v36 = vmul.f32 %v560_v32, %v560_v32  ;;  %v588_v37 = vmul.f32 %v1527_v33, %v559_v31 }
  0x88   : > { %v510_v20 = vsel %vm1714_vm1, %v508_v18, 0.0  ;;  %v524_v25 = vsel %vm1714_vm1, %v522_v23, 0.0  ;;  %v589_v38 = vmul.f32 %v1530_v34, %v560_v32  ;;  %v604_v40 = vsel %vm1714_vm1, %v602_v35, 0.0 }
  0x89   : > { %v1516_v21 = vadd.f32 %v510_v20, %v509_v19  ;;  %v1520_v29 = vadd.f32 %v524_v25, %v523_v24  ;;  %v605_v41 = vsel %vm1714_vm1, %v603_v36, 0.0  ;;  %v590_v42 = vsel %vm1714_vm1, %v588_v37, 0.0 }
  0x8a   : > { %v591_v43 = vsel %vm1714_vm1, %v589_v38, 0.0  ;;  %v606_v46 = vadd.f32 %v605_v41, %v604_v40  ;;  %v399_v17 = vsel %vm1714_vm1, %v1486_v58, 0.0  ;;  %v400_v18 = vsel %vm1714_vm1, %v1490_v60, 0.0 }
  0x8b   : > { %v592_v47 = vadd.f32 %v591_v43, %v590_v42  ;;  %v401_v19 = vadd.f32 %v400_v18, %v399_v17  ;;  %v480_v20 = vsel %vm1714_vm1, %v1507_v15, 0.0  ;;  %v481_v22 = vsel %vm1714_vm1, %v1510_v16, 0.0 }
  0x8c   : > { %v482_v23 = vadd.f32 %v481_v22, %v480_v20  ;;  %v561_v24 = vsel %vm1714_vm1, %v1527_v33, 0.0  ;;  %v562_v25 = vsel %vm1714_vm1, %v1530_v34, 0.0  ;;  %v317_v31 = vrot.slane %v1450_v3, 7 }
  0x8d   : > { %v563_v26 = vadd.f32 %v562_v25, %v561_v24  ;;  %v321_v32 = vrot.slane %v1447_v2, 1 }
  0xce   : > { %v328_v4 = vpop.permute.xlu0 %327  ;;  %v350_v28 = vpop.permute.xlu1 %349 }
  0xcf   : > { %v329_v5 = vsel %vm326_vm0, %v328_v4, %v1447_v2  ;;  %v441_v4 = vmul.f32 %v398_v59, %v398_v59  ;;  %v639_v59 = vld [vmem:[#allocation2 + $0x38] sm:$0xff] }
  0xd0   : > { %333 = vrot.lane.b32.xlu1 %v329_v5, %s1269_s16  ;;  %v428_v5 = vsel %vm1714_vm1, %v426_v61, 0.0 }
  0xd1   : > { %v443_v8 = vsel %vm1714_vm1, %v441_v4, 0.0  ;;  %v1547_v4 = vsel %vm632_vm11, 1.0, %v1272_v57 }
  0xd2   : > { %v331_v6 = vpop.permute.xlu0 %330 }
  0xd3   : > { %v332_v7 = vsel %vm326_vm0, %v331_v6, %v1450_v3  ;;  %v442_v6 = vsel %vm1714_vm1, %v440_v62, 0.0  ;;  %v640_v62 = vmul.f32 %v1479_v54, %v638_v56 }
  0xd4   : > { %335 = vrot.lane.b32.xlu1 %v332_v7, %s1269_s16  ;;  %v429_v7 = vsel %vm1714_vm1, %v427_v63, 0.0  ;;  %v1500_v10 = vadd.f32 %v443_v8, %v442_v6  ;;  %v641_v63 = vmul.f32 %v1482_v55, %v639_v59 }
  0xd5   : > { %v1498_v9 = vadd.f32 %v429_v7, %v428_v5  ;;  %v669_v5 = vmul.f32 %v1547_v4, %v640_v62  ;;  %v683_v55 = vmul.f32 %v640_v62, %v640_v62 }
  0xd6   : > { %v348_v30 = vpop.permute.xlu0 %347  ;;  %v670_v6 = vmul.f32 %v1550_v0, %v641_v63  ;;  %v684_v11 = vmul.f32 %v641_v63, %v641_v63 }
  0xd7   : > { %v671_v7 = vsel %vm1714_vm1, %v669_v5, 0.0  ;;  %v685_v12 = vsel %vm1714_vm1, %v683_v55, 0.0 }
  0xd8   : > { %367 = vrot.lane.b32.xlu1 %v1450_v3, %s1271_s18  ;;  %v672_v8 = vsel %vm1714_vm1, %v670_v6, 0.0  ;;  %v686_v13 = vsel %vm1714_vm1, %v684_v11, 0.0 }
  0xd9   : > { %v1556_v54 = vadd.f32 %v672_v8, %v671_v7  ;;  %v1560_v14 = vadd.f32 %v686_v13, %v685_v12 }
  0xda   : > { %v366_v45 = vpop.permute.xlu0 %365 }
 0x142   : > { %v334_v39 = vpop.permute.xlu1 %333 }
 0x143   : > { %v337_v44 = vsel %vm326_vm0, %v334_v39, %v1447_v2 }
 0x144   : > { %vm353_vm8 = vcmp.eq.f32.partialorder %v337_v44, %v348_v30  ;;  %vm371_vm9 = vcmp.eq.f32.partialorder %v337_v44, %v366_v45 }
 0x145   : > { %v355_v49 = vsel %vm353_vm8, 1, %v1273_v48  ;;  %v373_v52 = vsel %vm371_vm9, 1, %v1273_v48 }
 0x146   : > { %v336_v50 = vpop.permute.xlu1 %335  ;;  %357 = vrot.lane.b32.xlu0 %v355_v49, %s1274_s23 }
 0x147   : > { %v338_v51 = vsel %vm326_vm0, %v336_v50, %v1450_v3 }
 0x148   : > { %vm354_vm10 = vcmp.eq.f32.partialorder %v338_v51, %v350_v28  ;;  %v299_v28 = vlaneseq }
 0x149   : > { %v356_v53 = vsel %vm354_vm10, 1, %v1273_v48 }
 0x14a   : > { %359 = vrot.lane.b32.xlu1 %v356_v53, %s1274_s23  ;;  %v368_v61 = vpop.permute.xlu1 %367  ;;  %375 = vrot.lane.b32.xlu0 %v373_v52, %s1275_s30  ;;  %v300_v30 = vshrl.u32 %v299_v28, 7  ;;  %v303_v37 = vand.u32 127, %v299_v28  ;;  %s949_s23 = sld [smem:[#allocation3 + $0x100]] }
 0x14b   : > { %vm372_vm13 = vcmp.eq.f32.partialorder %v338_v51, %v368_v61 }
 0x14c   : > { %v374_v1 = vsel %vm372_vm13, 1, %v1273_v48  ;;  %vm318_vm14 = vcmp.lt.s32.totalorder %v300_v30, 1  ;;  %vm323_vm15 = vcmp.lt.s32.totalorder %v300_v30, 7  ;;  %v301_v38 = vadd.s32 8, %v300_v30 }
 0x14d   : > { %vm304_vm3 = vcmp.gt.s32.totalorder %v300_v30, 0  ;;  %vm310_vm4 = vcmp.gt.s32.totalorder %v303_v37, 0  ;;  %vm313_vm10 = vcmp.lt.s32.totalorder %v303_v37, 15 }
 0x14e   : > { %377 = vrot.lane.b32.xlu1 %v374_v1, %s1275_s30  ;;  %vm307_vm5 = vcmp.lt.s32.totalorder %v301_v38, 15  ;;  %vm311_vm9 = vmand %vm304_vm3, %vm310_vm4 }
 0x14f   : > { %vm312_vm11 = vmand %vm307_vm5, %vm310_vm4 }
 0x169   : > { %402 = vadd.xlane.f32.xlu0 %v401_v19 }
 0x16d   : > { %431 = vadd.xlane.f32.xlu0 %v1498_v9  ;;  %v642_v9 = vsel %vm1714_vm1, %v1547_v4, 0.0 }
 0x171   : > { %445 = vadd.xlane.f32.xlu0 %v1500_v10  ;;  %v643_v10 = vsel %vm1714_vm1, %v1550_v0, 0.0  ;;  %vm314_vm1 = vmand %vm311_vm9, %vm313_vm10 }
 0x172   : > { %483 = vadd.xlane.f32.xlu1 %v482_v23  ;;  %v644_v27 = vadd.f32 %v643_v10, %v642_v9 }
 0x175   : > { %526 = vadd.xlane.f32.xlu0 %v1520_v29  ;;  %v322_v29 = vrot.slane %v1450_v3, 1 }
 0x176   : > { %512 = vadd.xlane.f32.xlu1 %v1516_v21  ;;  %v316_v21 = vrot.slane %v1447_v2, 7 }
 0x177   : > { %v324_v36 = vsel %vm323_vm15, %v321_v32, %v322_v29  ;;  %v325_v40 = vsel %vm323_vm15, %v322_v29, %v321_v32  ;;  %vm315_vm15 = vmand %vm312_vm11, %vm313_vm10 }
 0x178   : > { %v320_v35 = vsel %vm318_vm14, %v317_v31, %v316_v21  ;;  %vm341_vm2 = vcmp.eq.f32.partialorder %v324_v36, %v1447_v2  ;;  %v319_v39 = vsel %vm318_vm14, %v316_v21, %v317_v31  ;;  %vm342_vm8 = vcmp.eq.f32.partialorder %v325_v40, %v1450_v3 }
 0x179   : > { %607 = vadd.xlane.f32.xlu0 %v606_v46  ;;  %vm339_vm0 = vcmp.eq.f32.partialorder %v320_v35, %v1447_v2  ;;  %vm340_vm7 = vcmp.eq.f32.partialorder %v319_v39, %v1450_v3 }
 0x17a   : > { %564 = vadd.xlane.f32.xlu1 %v563_v26  ;;  %vm343_vm6 = vmand %vm339_vm0, %vm341_vm2 }
 0x17b   : > { %vm344_vm13 = vmand %vm340_vm7, %vm342_vm8 }
 0x17e   : > { %593 = vadd.xlane.f32.xlu1 %v592_v47 }
 0x182   : > { %645 = vadd.xlane.f32.xlu1 %v644_v27 }
 0x1b8   : > { %v358_v41 = vpop.permute.xlu0 %357 }
 0x1b9   : > { %vm361_vm12 = vcmp.ne.s32.totalorder %v358_v41, 0 }
 0x1ba   : > { %vm363_vm0 = vmand %vm343_vm6, %vm361_vm12 }
 0x1bc   : > { %v360_v42 = vpop.permute.xlu1 %359  ;;  %v376_v43 = vpop.permute.xlu0 %375 }
 0x1bd   : > { %vm379_vm14 = vcmp.ne.s32.totalorder %v376_v43, 0  ;;  %vm362_vm2 = vcmp.ne.s32.totalorder %v360_v42, 0 }
 0x1be   : > { %vm381_vm3 = vmand %vm363_vm0, %vm379_vm14 }
 0x1bf   : > { %vm383_vm4 = vmand %vm381_vm3, %vm314_vm1  ;;  %vm1725_vm1 = vcmask 130048  }
 0x1c0   : > { %v378_v2 = vpop.permute.xlu1 %377  ;;  %vm364_vm5 = vmand %vm344_vm13, %vm362_vm2  ;;  %v934_v44 = vsel %vm383_vm4, 1.0, %v1272_v57 }
 0x1c1   : > { %vm380_vm7 = vcmp.ne.s32.totalorder %v378_v2, 0  ;;  %v492_v3 = vmul.f32 %v1507_v15, %v934_v44  ;;  %v411_v45 = vmul.f32 %v1486_v58, %v934_v44  ;;  %v573_v50 = vmul.f32 %v1527_v33, %v934_v44  ;;  %vm1726_vm6 = vmmov %vm1725_vm1 }
 0x1c2   : > { %vm382_vm8 = vmand %vm364_vm5, %vm380_vm7  ;;  %v654_v33 = vmul.f32 %v1547_v4, %v934_v44 }
 0x1c3   : > { %vm384_vm9 = vmand %vm382_vm8, %vm315_vm15  ;;  %v494_v51 = vsel %vm1725_vm1, %v492_v3, 0.0 }
 0x1c4   : > { %v935_v46 = vsel %vm384_vm9, 1.0, %v1272_v57  ;;  %vm1727_vm10 = vmmov %vm1725_vm1 }
 0x1c5   : > { %v493_v47 = vmul.f32 %v1510_v16, %v935_v46  ;;  %v412_v48 = vmul.f32 %v1490_v60, %v935_v46  ;;  %v574_v49 = vmul.f32 %v1530_v34, %v935_v46  ;;  %v413_v53 = vsel %vm1727_vm10, %v411_v45, 0.0  ;;  %vm1728_vm11 = vmmov %vm1725_vm1 }
 0x1c6   : > { %vm1729_vm12 = vmmov %vm1725_vm1  ;;  %v655_v60 = vmul.f32 %v1550_v0, %v935_v46 }
 0x1c7   : > { %v495_v52 = vsel %vm1726_vm6, %v493_v47, 0.0  ;;  %v414_v15 = vsel %vm1728_vm11, %v412_v48, 0.0  ;;  %v576_v57 = vsel %vm1729_vm12, %v574_v49, 0.0  ;;  %vm1730_vm13 = vmmov %vm1725_vm1 }
 0x1c8   : > { %v496_v56 = vadd.f32 %v495_v52, %v494_v51  ;;  %v415_v58 = vadd.f32 %v414_v15, %v413_v53  ;;  %v575_v16 = vsel %vm1730_vm13, %v573_v50, 0.0  ;;  %vm1731_vm14 = vmmov %vm1725_vm1 }
 0x1c9   : > { %v577_v34 = vadd.f32 %v576_v57, %v575_v16  ;;  %v657_v59 = vsel %vm1731_vm14, %v655_v60, 0.0  ;;  %vm1732_vm15 = vmmov %vm1725_vm1 }
 0x1ca   : > { %497 = vadd.xlane.f32.xlu0 %v496_v56  ;;  %416 = vadd.xlane.f32.xlu1 %v415_v58  ;;  %v656_v61 = vsel %vm1732_vm15, %v654_v33, 0.0 }
 0x1cb   : > { %v658_v62 = vadd.f32 %v657_v59, %v656_v61 }
 0x1ce   : > { %578 = vadd.xlane.f32.xlu0 %v577_v34  ;;  %674 = vadd.xlane.f32.xlu1 %v1556_v54 }
 0x1d2   : > { %659 = vadd.xlane.f32.xlu0 %v658_v62 }
 0x1d6   : > { %688 = vadd.xlane.f32.xlu0 %v1560_v14 }
 0x1f6   : > { %v403_v63 = vpop.xlane.xlu0 %402 }
 0x1f7   : > { %v404_v4 = vrot.slane %v403_v63, 4 }
 0x1f9   : > { %v405_v0 = vadd.f32 %v404_v4, %v403_v63 }
 0x1fa   : > { %v432_v55 = vpop.xlane.xlu0 %431 }
 0x1fb   : > { %v406_v1 = vrot.slane %v405_v0, 2  ;;  %v433_v13 = vrot.slane %v432_v55, 4 }
 0x1fd   : > { %v407_v5 = vadd.f32 %v406_v1, %v405_v0  ;;  %v434_v17 = vadd.f32 %v433_v13, %v432_v55 }
 0x1fe   : > { %v446_v12 = vpop.xlane.xlu0 %445 }
 0x1ff   : > { %v408_v6 = vrot.slane %v407_v5, 1  ;;  %v484_v8 = vpop.xlane.xlu1 %483  ;;  %v447_v18 = vrot.slane %v446_v12, 4  ;;  %v435_v22 = vrot.slane %v434_v17, 2 }
 0x200   : > { %v485_v20 = vrot.slane %v484_v8, 4 }
 0x201   : > { %v409_v7 = vadd.f32 %v408_v6, %v407_v5  ;;  %v448_v23 = vadd.f32 %v447_v18, %v446_v12  ;;  %v436_v30 = vadd.f32 %v435_v22, %v434_v17 }
 0x202   : > { %v527_v19 = vpop.xlane.xlu0 %526  ;;  %v486_v26 = vadd.f32 %v485_v20, %v484_v8 }
 0x203   : > { %985 = vpush %v409_v7  ;;  %v513_v54 = vpop.xlane.xlu1 %512  ;;  %v528_v25 = vrot.slane %v527_v19, 4  ;;  %v449_v27 = vrot.slane %v448_v23, 2  ;;  %v437_v42 = vrot.slane %v436_v30, 1 }
 0x204   : > { %v514_v9 = vrot.slane %v513_v54, 4  ;;  %v487_v29 = vrot.slane %v486_v26, 2 }
 0x205   : > { %v529_v31 = vadd.f32 %v528_v25, %v527_v19  ;;  %v450_v43 = vadd.f32 %v449_v27, %v448_v23  ;;  %v438_v57 = vadd.f32 %v437_v42, %v436_v30 }
 0x206   : > { %v608_v10 = vpop.xlane.xlu0 %607  ;;  %v515_v21 = vadd.f32 %v514_v9, %v513_v54  ;;  %v488_v50 = vadd.f32 %v487_v29, %v486_v26 }
 0x207   : > { %v565_v11 = vpop.xlane.xlu1 %564  ;;  %v609_v32 = vrot.slane %v608_v10, 4  ;;  %v530_v2 = vrot.slane %v529_v31, 2  ;;  %v451_v60 = vrot.slane %v450_v43, 1 }
 0x208   : > { %v566_v28 = vrot.slane %v565_v11, 4  ;;  %v516_v45 = vrot.slane %v515_v21, 2  ;;  %v489_v7 = vrot.slane %v488_v50, 1 }
 0x209   : > { %v610_v46 = vadd.f32 %v609_v32, %v608_v10  ;;  %v531_v59 = vadd.f32 %v530_v2, %v529_v31  ;;  %v452_v54 = vadd.f32 %v451_v60, %v450_v43 }
 0x20a   : > { %v567_v40 = vadd.f32 %v566_v28, %v565_v11  ;;  %v517_v0 = vadd.f32 %v516_v45, %v515_v21  ;;  %v490_v10 = vadd.f32 %v489_v7, %v488_v50 }
 0x20b   : > { %v594_v14 = vpop.xlane.xlu1 %593  ;;  %v611_v61 = vrot.slane %v610_v46, 2 }
 0x20c   : > { %v595_v35 = vrot.slane %v594_v14, 4  ;;  %v568_v56 = vrot.slane %v567_v40, 2  ;;  %v518_v20 = vrot.slane %v517_v0, 1 }
 0x20d   : > { %v612_v23 = vadd.f32 %v611_v61, %v610_v46 }
 0x20e   : > { %v596_v47 = vadd.f32 %v595_v35, %v594_v14  ;;  %v569_v11 = vadd.f32 %v568_v56, %v567_v40  ;;  %v532_v14 = vrot.slane %v531_v59, 1  ;;  %v519_v21 = vadd.f32 %v518_v20, %v517_v0 }
 0x20f   : > { %v646_v24 = vpop.xlane.xlu1 %645 }
 0x210   : > { %v647_v41 = vrot.slane %v646_v24, 4  ;;  %v597_v62 = vrot.slane %v596_v47, 2  ;;  %v570_v27 = vrot.slane %v569_v11, 1  ;;  %v533_v32 = vadd.f32 %v532_v14, %v531_v59 }
 0x212   : > { %v648_v58 = vadd.f32 %v647_v41, %v646_v24  ;;  %v598_v22 = vadd.f32 %v597_v62, %v596_v47  ;;  %v571_v40 = vadd.f32 %v570_v27, %v569_v11 }
 0x214   : > { %v649_v8 = vrot.slane %v648_v58, 2  ;;  %v599_v35 = vrot.slane %v598_v22, 1 }
 0x216   : > { %v650_v28 = vadd.f32 %v649_v8, %v648_v58  ;;  %v600_v43 = vadd.f32 %v599_v35, %v598_v22 }
 0x218   : > { %v651_v41 = vrot.slane %v650_v28, 1 }
 0x21a   : > { %v652_v46 = vadd.f32 %v651_v41, %v650_v28 }
 0x234   : > { %s1642_s12 = spop %985 }
 0x235   : > { %s455_s28 = sadd.f32 %s1642_s12, %s454_s24  ;;  %s951_s24 = sld [smem:[#allocation3 + $0x102]] }
 0x237   : > { %457 = sst [smem:[#allocation3]] %s455_s28 }
 0x257   : > { %v498_v36 = vpop.xlane.xlu0 %497  ;;  %v417_v37 = vpop.xlane.xlu1 %416 }
 0x258   : > { %v499_v38 = vrot.slane %v498_v36, 4  ;;  %v418_v39 = vrot.slane %v417_v37, 4 }
 0x25a   : > { %v500_v44 = vadd.f32 %v499_v38, %v498_v36  ;;  %v419_v3 = vadd.f32 %v418_v39, %v417_v37  ;;  %v613_v38 = vrot.slane %v612_v23, 1 }
 0x25b   : > { %v579_v48 = vpop.xlane.xlu0 %578  ;;  %v675_v49 = vpop.xlane.xlu1 %674 }
 0x25c   : > { %v501_v51 = vrot.slane %v500_v44, 2  ;;  %v420_v52 = vrot.slane %v419_v3, 2  ;;  %v580_v53 = vrot.slane %v579_v48, 4  ;;  %v676_v15 = vrot.slane %v675_v49, 4 }
 0x25e   : > { %v581_v16 = vadd.f32 %v580_v53, %v579_v48  ;;  %v421_v33 = vadd.f32 %v420_v52, %v419_v3  ;;  %v502_v34 = vadd.f32 %v501_v51, %v500_v44  ;;  %v677_v63 = vadd.f32 %v676_v15, %v675_v49 }
 0x25f   : > { %v660_v4 = vpop.xlane.xlu0 %659  ;;  %v614_v44 = vadd.f32 %v613_v38, %v612_v23 }
 0x260   : > { %v582_v1 = vrot.slane %v581_v16, 2  ;;  %v661_v5 = vrot.slane %v660_v4, 4  ;;  %v422_v6 = vrot.slane %v421_v33, 1  ;;  %v503_v55 = vrot.slane %v502_v34, 1 }
 0x261   : > { %v678_v18 = vrot.slane %v677_v63, 2 }
 0x262   : > { %v662_v12 = vadd.f32 %v661_v5, %v660_v4  ;;  %v423_v13 = vadd.f32 %v422_v6, %v421_v33  ;;  %v583_v17 = vadd.f32 %v582_v1, %v581_v16  ;;  %v504_v26 = vadd.f32 %v503_v55, %v502_v34 }
 0x263   : > { %v689_v19 = vpop.xlane.xlu0 %688  ;;  %v679_v29 = vadd.f32 %v678_v18, %v677_v63 }
 0x264   : > { %v663_v24 = vrot.slane %v662_v12, 2  ;;  %v690_v25 = vrot.slane %v689_v19, 4  ;;  %987 = vpush %v423_v13  ;;  %v584_v9 = vrot.slane %v583_v17, 1 }
 0x265   : > { %989 = vpush %v438_v57  ;;  %v680_v2 = vrot.slane %v679_v29, 1 }
 0x266   : > { %v691_v30 = vadd.f32 %v690_v25, %v689_v19  ;;  %991 = vpush %v452_v54  ;;  %v664_v31 = vadd.f32 %v663_v24, %v662_v12  ;;  %v585_v37 = vadd.f32 %v584_v9, %v583_v17 }
 0x267   : > { %993 = vpush %v490_v10  ;;  %v681_v48 = vadd.f32 %v680_v2, %v679_v29 }
 0x268   : > { %v692_v36 = vrot.slane %v691_v30, 2  ;;  %995 = vpush %v504_v26  ;;  %v665_v39 = vrot.slane %v664_v31, 1 }
 0x269   : > { %997 = vpush %v519_v21 }
 0x26a   : > { %v693_v42 = vadd.f32 %v692_v36, %v691_v30  ;;  %999 = vpush %v533_v32  ;;  %v666_v3 = vadd.f32 %v665_v39, %v664_v31 }
 0x26b   : > { %1001 = vpush %v571_v40 }
 0x26c   : > { %1003 = vpush %v585_v37  ;;  %v694_v45 = vrot.slane %v693_v42, 1 }
 0x26d   : > { %1005 = vpush %v600_v43 }
 0x26e   : > { %1007 = vpush %v614_v44  ;;  %v695_v47 = vadd.f32 %v694_v45, %v693_v42 }
 0x26f   : > { %1009 = vpush %v652_v46 }
 0x270   : > { %1011 = vpush %v666_v3 }
 0x271   : > { %1013 = vpush %v681_v48 }
 0x272   : > { %1015 = vpush %v695_v47 }
 0x295   : > { %s988_s9 = spop %987 }
 0x296   : > { %s425_s21 = ssub.f32 %s1642_s12, %s988_s9  ;;  %s990_s22 = spop %989 }
 0x297   : > { %s463_s25 = sadd.f32 %s990_s22, %s939_s5  ;;  %s992_s29 = spop %991 }
 0x298   : > { %s459_s3 = sadd.f32 %s938_s6, %s425_s21  ;;  %s994_s27 = spop %993 }
 0x299   : > { %465 = sst [smem:[#allocation3 + $0x2]] %s463_s25  ;;  %s996_s20 = spop %995 }
 0x29a   : > { %461 = sst [smem:[#allocation3 + $0x1]] %s459_s3  ;;  %s998_s30 = spop %997 }
 0x29b   : > { %s467_s16 = sadd.f32 %s992_s29, %s940_s7  ;;  %s1000_s12 = spop %999 }
 0x29c   : > { %s536_s18 = sadd.f32 %s994_s27, %s943_s8  ;;  %s950_s5 = sld [smem:[#allocation3 + $0x101]] }
 0x29d   : > { %469 = sst [smem:[#allocation3 + $0x3]] %s467_s16  ;;  %s1002_s6 = spop %1001 }
 0x29e   : > { %538 = sst [smem:[#allocation3 + $0x80]] %s536_s18  ;;  %s952_s21 = sld [smem:[#allocation3 + $0x103]] }
 0x29f   : > { %s506_s4 = ssub.f32 %s994_s27, %s996_s20  ;;  %s1004_s25 = spop %1003 }
 0x2a0   : > { %s544_s28 = sadd.f32 %s998_s30, %s945_s15  ;;  %s955_s7 = sld [smem:[#allocation3 + $0x180]] }
 0x2a1   : > { %s540_s9 = sadd.f32 %s944_s19, %s506_s4  ;;  %s1006_s8 = spop %1005 }
 0x2a2   : > { %546 = sst [smem:[#allocation3 + $0x82]] %s544_s28  ;;  %s1008_s27 = spop %1007 }
 0x2a3   : > { %542 = sst [smem:[#allocation3 + $0x81]] %s540_s9  ;;  %s957_s16 = sld [smem:[#allocation3 + $0x182]] }
 0x2a4   : > { %s548_s22 = sadd.f32 %s1000_s12, %s946_s26  ;;  %s956_s15 = sld [smem:[#allocation3 + $0x181]] }
 0x2a5   : > { %s617_s3 = sadd.f32 %s1002_s6, %s949_s23  ;;  %s1010_s19 = spop %1009 }
 0x2a6   : > { %550 = sst [smem:[#allocation3 + $0x83]] %s548_s22  ;;  %s1012_s4 = spop %1011 }
 0x2a7   : > { %619 = sst [smem:[#allocation3 + $0x100]] %s617_s3  ;;  %s958_s9 = sld [smem:[#allocation3 + $0x183]] }
 0x2a8   : > { %s587_s29 = ssub.f32 %s1002_s6, %s1004_s25  ;;  %s1014_s26 = spop %1013 }
 0x2a9   : > { %s625_s18 = sadd.f32 %s1006_s8, %s951_s24  ;;  %s1016_s3 = spop %1015 }
 0x2aa   : > { %s621_s20 = sadd.f32 %s950_s5, %s587_s29  ;;  %s717_s5 = sld [smem:[#allocation3]] (!%p959_p13) }
 0x2ab   : > { %627 = sst [smem:[#allocation3 + $0x102]] %s625_s18  ;;  %s962_s8 = sld [smem:[#allocation3 + $0x3]] (!%p959_p13) }
 0x2ac   : > { %623 = sst [smem:[#allocation3 + $0x101]] %s621_s20  ;;  %s1647_s18 = sld [smem:[#allocation3 + $0x80]] (!%p959_p13) }
 0x2ad   : > { %s629_s30 = sadd.f32 %s1008_s27, %s952_s21  ;;  %s960_s21 = sld [smem:[#allocation3 + $0x1]] (!%p959_p13) }
 0x2ae   : > { %s698_s28 = sadd.f32 %s1010_s19, %s955_s7  ;;  %s1649_s27 = sld [smem:[#allocation3 + $0x2]] (!%p959_p13) }
 0x2af   : > { %631 = sst [smem:[#allocation3 + $0x103]] %s629_s30 }
 0x2b0   : > { %700 = sst [smem:[#allocation3 + $0x180]] %s698_s28 }
 0x2b1   : > { %s668_s23 = ssub.f32 %s1010_s19, %s1012_s4  ;;  %s1277_s19 = smov (!%p959_p13), 0.8  }
 0x2b2   : > { %s706_s12 = sadd.f32 %s1014_s26, %s957_s16  ;;  %716 = sbr.rel (%p959_p13) target bundleno = 1085 (0x43d), region = 44 }
 0x2b3   : > { %s702_s22 = sadd.f32 %s956_s15, %s668_s23 }
 0x2b4   : > { %708 = sst [smem:[#allocation3 + $0x182]] %s706_s12 }
 0x2b5   : > { %704 = sst [smem:[#allocation3 + $0x181]] %s702_s22 }
 0x2b6   : > { %s710_s24 = sadd.f32 %s1016_s3, %s958_s9  ;;  %s965_s22 = sld [smem:[#allocation3 + $0x81]] (!%p959_p13) }
 0x2b7   : > { %s722_s6 = sadd.f32 (!%p959_p13), 1e-05, %s717_s5 }
 0x2b8   : > { %712 = sst [smem:[#allocation3 + $0x183]] %s710_s24 }
 0x2b9   : > { %v723_v49 = vstv %s722_s6  ;;  %s721_s25 = sadd.f32 1e-05, %s960_s21  ;;  %s967_s6 = sld [smem:[#allocation3 + $0x83]] }
 0x2ba   : > { %1133 = vrcp.f32 %v723_v49  ;;  %s1652_s4 = sadd.f32 %s962_s8, %s717_s5  ;;  %s966_s8 = sld [smem:[#allocation3 + $0x82]] }
 0x2bb   : > { %s749_s9 = sadd.f32 1e-05, %s1647_s18 }
 0x2bc   : > { %s748_s3 = sadd.f32 1e-05, %s965_s22 }
 0x2bd   : > { %v750_v51 = vstv %s749_s9 }
 0x2be   : > { %1135 = vrcp.f32 %v750_v51 }
 0x2c0   : > { %s759_s22 = smul.f32 2.0, %s966_s8 }
 0x2c4   : > { %v1134_v50 = vpop.eup %1133 }
 0x2c5   : > { %1017 = vpush %v1134_v50 }
 0x2c8   : > { %v1136_v53 = vpop.eup %1135 }
 0x2f6   : > { %s1018_s7 = spop %1017 }
 0x2f7   : > { %s726_s29 = smul.f32 %s1018_s7, %s721_s25  ;;  %s1659_s7 = sld [smem:[#allocation3 + $0x100]] }
 0x2f9   : > { %s727_s16 = ssub.f32 1.0, %s726_s29 }
 0x2fb   : > { %s728_s20 = smul.f32 2.0, %s727_s16 }
 0x2fd   : > { %s963_s15 = sadd.f32 -1.0, %s728_s20 }
 0x2ff   : > { %s730_s30 = smin.f32 %s1277_s19, %s963_s15  ;;  %s758_s15 = sadd.f32 %s967_s6, %s1647_s18 }
 0x300   : > { %s735_s28 = sadd.f32 1.0, %s730_s30 }
 0x301   : > { %s760_s18 = ssub.f32 %s758_s15, %s759_s22 }
 0x302   : > { %s736_s26 = smul.f32 %s1649_s27, %s735_s28  ;;  %s776_s28 = sadd.f32 1e-05, %s1659_s7 }
 0x304   : > { %s737_s23 = ssub.f32 %s1652_s4, %s736_s26  ;;  %v777_v56 = vstv %s776_s28  ;;  %s972_s28 = sld [smem:[#allocation3 + $0x103]] }
 0x306   : > { %s738_s12 = sadd.f32 1e-05, %s737_s23 }
 0x308   : > { %v739_v52 = vstv %s738_s12  ;;  %s732_s12 = smul.f32 2.0, %s1649_s27 }
 0x309   : > { %1137 = vrcp.f32 %v739_v52 }
 0x30a   : > { %1139 = vrcp.f32 %v777_v56 }
 0x313   : > { %v1138_v15 = vpop.eup %1137 }
 0x314   : > { %1019 = vpush %v1138_v15  ;;  %v1140_v57 = vpop.eup %1139 }
 0x315   : > { %1021 = vpush %v1136_v53 }
 0x345   : > { %s1657_s24 = spop %1019 }
 0x346   : > { %s1022_s5 = spop %1021 }
 0x347   : > { %s753_s21 = smul.f32 %s1022_s5, %s748_s3  ;;  %s970_s3 = sld [smem:[#allocation3 + $0x101]] }
 0x348   : > { %s733_s5 = ssub.f32 %s1652_s4, %s732_s12  ;;  %s971_s4 = sld [smem:[#allocation3 + $0x102]] }
 0x349   : > { %s754_s25 = ssub.f32 1.0, %s753_s21 }
 0x34a   : > { %s734_s6 = sadd.f32 1e-05, %s733_s5 }
 0x34b   : > { %s755_s29 = smul.f32 2.0, %s754_s25  ;;  %s761_s21 = sadd.f32 1e-05, %s760_s18 }
 0x34d   : > { %s968_s16 = sadd.f32 -1.0, %s755_s29  ;;  %s1667_s29 = smul.f32 %s1657_s24, %s734_s6 }
 0x34e   : > { %s775_s25 = sadd.f32 1e-05, %s970_s3 }
 0x34f   : > { %s757_s20 = smin.f32 %s1277_s19, %s968_s16  ;;  %s785_s24 = sadd.f32 %s972_s28, %s1659_s7 }
 0x350   : > { %s762_s30 = sadd.f32 1.0, %s757_s20 }
 0x352   : > { %s763_s9 = smul.f32 %s966_s8, %s762_s30  ;;  %s1673_s8 = sld [smem:[#allocation3 + $0x180]] }
 0x354   : > { %s764_s26 = ssub.f32 %s758_s15, %s763_s9 }
 0x356   : > { %s765_s23 = sadd.f32 1e-05, %s764_s26 }
 0x358   : > { %v766_v58 = vstv %s765_s23  ;;  %s803_s3 = sadd.f32 1e-05, %s1673_s8 }
 0x359   : > { %1141 = vrcp.f32 %v766_v58 }
 0x35a   : > { %v804_v16 = vstv %s803_s3  ;;  %s976_s3 = sld [smem:[#allocation3 + $0x182]] }
 0x35b   : > { %1143 = vrcp.f32 %v804_v16 }
 0x363   : > { %v1142_v60 = vpop.eup %1141 }
 0x364   : > { %1023 = vpush %v1142_v60 }
 0x365   : > { %1025 = vpush %v1140_v57  ;;  %v1144_v34 = vpop.eup %1143 }
 0x395   : > { %s1024_s16 = spop %1023 }
 0x396   : > { %s1669_s20 = smul.f32 %s1024_s16, %s761_s21  ;;  %s1026_s30 = spop %1025 }
 0x397   : > { %s780_s9 = smul.f32 %s1026_s30, %s775_s25  ;;  %s975_s25 = sld [smem:[#allocation3 + $0x181]] }
 0x398   : > { %s770_s26 = sadd.f32 %s1669_s20, %s1667_s29  ;;  %s786_s21 = smul.f32 2.0, %s971_s4 }
 0x399   : > { %s781_s27 = ssub.f32 1.0, %s780_s9 }
 0x39a   : > { %s787_s16 = ssub.f32 %s785_s24, %s786_s21  ;;  %s813_s21 = smul.f32 2.0, %s976_s3 }
 0x39b   : > { %s782_s15 = smul.f32 2.0, %s781_s27 }
 0x39c   : > { %s788_s7 = sadd.f32 1e-05, %s787_s16 }
 0x39d   : > { %s973_s23 = sadd.f32 -1.0, %s782_s15  ;;  %s977_s15 = sld [smem:[#allocation3 + $0x183]] }
 0x39e   : > { %s802_s30 = sadd.f32 1e-05, %s975_s25 }
 0x39f   : > { %s784_s12 = smin.f32 %s1277_s19, %s973_s23 }
 0x3a0   : > { %s789_s22 = sadd.f32 1.0, %s784_s12 }
 0x3a2   : > { %s790_s5 = smul.f32 %s971_s4, %s789_s22 }
 0x3a3   : > { %s812_s0 = sadd.f32 %s977_s15, %s1673_s8 }
 0x3a4   : > { %s791_s18 = ssub.f32 %s785_s24, %s790_s5 }
 0x3a5   : > { %s814_s25 = ssub.f32 %s812_s0, %s813_s21 }
 0x3a6   : > { %s792_s6 = sadd.f32 1e-05, %s791_s18 }
 0x3a7   : > { %s815_s16 = sadd.f32 1e-05, %s814_s25 }
 0x3a8   : > { %v793_v33 = vstv %s792_s6 }
 0x3a9   : > { %1145 = vrcp.f32 %v793_v33 }
 0x3b3   : > { %v1146_v59 = vpop.eup %1145 }
 0x3b4   : > { %1027 = vpush %v1146_v59 }
 0x3b5   : > { %1029 = vpush %v1144_v34 }
 0x3e5   : > { %s1028_s28 = spop %1027 }
 0x3e6   : > { %s796_s9 = smul.f32 %s1028_s28, %s788_s7  ;;  %s1030_s27 = spop %1029 }
 0x3e7   : > { %s807_s23 = smul.f32 %s1030_s27, %s802_s30 }
 0x3e8   : > { %s797_s12 = sadd.f32 %s796_s9, %s770_s26 }
 0x3e9   : > { %s808_s22 = ssub.f32 1.0, %s807_s23 }
 0x3eb   : > { %s809_s5 = smul.f32 2.0, %s808_s22 }
 0x3ed   : > { %s978_s18 = sadd.f32 -1.0, %s809_s5 }
 0x3ef   : > { %s811_s6 = smin.f32 %s1277_s19, %s978_s18 }
 0x3f0   : > { %s816_s4 = sadd.f32 1.0, %s811_s6 }
 0x3f2   : > { %s817_s1 = smul.f32 %s976_s3, %s816_s4 }
 0x3f4   : > { %s818_s17 = ssub.f32 %s812_s0, %s817_s1 }
 0x3f6   : > { %s819_s24 = sadd.f32 1e-05, %s818_s17 }
 0x3f8   : > { %v820_v61 = vstv %s819_s24 }
 0x3f9   : > { %1147 = vrcp.f32 %v820_v61 }
 0x403   : > { %v1148_v62 = vpop.eup %1147 }
 0x404   : > { %1031 = vpush %v1148_v62 }
 0x435   : > { %s1032_s29 = spop %1031 }
 0x436   : > { %s823_s20 = smul.f32 %s1032_s29, %s815_s16 }
 0x438   : > { %s824_s26 = sadd.f32 %s823_s20, %s797_s12 }
 0x43a   : > { %s827_s7 = smul.f32 0.25, %s824_s26 }
 0x43c   : > { %829 = sst [smem:[#allocation9]] %s827_s7 }
 0x43d PF: > { %p1067_p6 = scmp.eq.s32.totalorder %s1313_s13, 1  ;;  %s1209_s1 = scalar_lea.hbm %s1711_s2, 16 }
 0x43e   : > { %p1210_p1 = scmp.ne.s32.totalorder %s1711_s2, %s1209_s1  ;;  %p1215_p9 = scmp.lt.u32.totalorder %s1209_s1, %s1711_s2 }
 0x440   : > { %p1211_p2 = pnand %p1210_p1, %p1067_p6 }
 0x442   : > { %p1212_p5 = pneg %p1211_p2 }
 0x444   : > { %p1217_p3 = pnand %p1215_p9, %p1212_p5 }
 0x446   : > { %1220 = shalt.err (!%p1217_p3)
}
 0x447   : > { %s1278_s9 = smov [#allocation9]  }
 0x448   : > { %1055 = dma.smem_to_hbm (%p1067_p6), %s1278_s9, 16, %s1711_s2, [#allocation6]  }
 0x449   : > { %1246 = dma.done.wait (%p1067_p6), [#allocation6], 16  }
 0x44a   : > { %1248 = vsyncadd (%p1067_p6), [#allocation6], 4294967280 }
 0x44b   : > { %843 = sfence }
 0x44c PF: > { %s1749_s13 = sld [smem:[#allocation13_spill]]  ;;  %p16_p4 = scmp.ge.s32.totalorder %s1316_s14, 4  }
 0x44d   : > { %s1750_s9 = smov %s1255_s10  ;;  %s1751_s10 = smov %s1259_s11 }
 0x44e   : > { %s1753_s12 = smov %s1316_s14  ;;  %18 = sbr.rel (!%p16_p4) target bundleno = 9 (0x9), region = 125 }
 0x452   : > { %s1752_s11 = smov %s1749_s13 }
 0x455   :  { %849 = vsyncpa [#allocation5], 1 }
 0x456   :  { %851 = vsyncpa [#allocation5 + $0x1], 1 }
 0x457   :  { %852 = vsyncpa [#allocation8], 1 }
 0x458   :  { %854 = vsyncpa [#allocation8 + $0x1], 1 }
 0x459   :  { %855 = vsyncpa [#allocation6], 1 }
 0x45a   :  { %857 = vsyncpa [#allocation6 + $0x1], 1 }

</bundles_post_ra>
